<compile_context>
chip_gen: v6e
topology: v6e:2x2x1
jax: 0.10.0
libtpu: 0.0.40
codegen_flags: <defaults>
</compile_context>

<pallas_src>
import jax
import jax.numpy as jnp
from jax import lax
from jax.experimental import pallas as pl
from jax.experimental.pallas import tpu as pltpu


def _mul_conv1x1_kernel(x_ref, s_ref, w_ref, o_ref):
    # x_ref: (Cin, HW)   native NCHW slab of one image, resident across Cout tiles
    # s_ref: (1, Cin)    lane-dense per-channel gate, resident
    # w_ref: (Ct, Cin)   one Cout tile of the 1x1-conv weight (pipelined)
    # o_ref: (HW, Ct)    lane-dense output tile (Cout on lanes)
    xt = jnp.transpose(x_ref[...], (1, 0))          # (HW, Cin): small XLU transpose, hidden under W DMA
    xs = xt * s_ref[...]                            # lane-dense gate, broadcast over HW sublanes
    o_ref[...] = lax.dot_general(
        xs, w_ref[...],
        dimension_numbers=(((1,), (1,)), ((), ())),  # contract Cin (last dim of both) -> (HW, Ct)
        preferred_element_type=jnp.float32,
    ).astype(o_ref.dtype)


def mul_conv1x1(x_nchw, scale_nc11, weight_oi11):
    """x_nchw: (N, Cin, H, W), scale_nc11: (1, Cin, 1, 1), weight: (Cout, Cin, 1, 1)."""
    N, Cin, H, W = x_nchw.shape
    Cout = weight_oi11.shape[0]
    HW = H * W

    x_cm = x_nchw.reshape(N, Cin, HW)       # free view of native NCHW layout
    s = scale_nc11.reshape(1, Cin)          # lane-dense gate (no (Cin,1) lane padding)
    w = weight_oi11.reshape(Cout, Cin)      # native (Cout, Cin); no W transpose materialized

    # Cout tiling: 128-wide lane-dense tiles give >=3 grid steps on every
    # generation, so the dominant weight DMA double-buffers against the
    # matmul, and v7x can spread tiles over its two TensorCores.
    # (192-wide tiles would balance v7x's 2 cores perfectly but violate the
    #  128-lane block rule; 96-wide would make output stores lane-sparse.)
    if Cout % 128 == 0 and Cout >= 256:
        cout_tile = 128
    else:
        cout_tile = Cout
    n_ct = Cout // cout_tile

    out = pl.pallas_call(
        _mul_conv1x1_kernel,
        out_shape=jax.ShapeDtypeStruct((N, HW, Cout), x_nchw.dtype),
        grid=(N, n_ct),
        in_specs=[
            pl.BlockSpec((None, Cin, HW), lambda n, c: (n, 0, 0)),  # X stays resident over c
            pl.BlockSpec((1, Cin), lambda n, c: (0, 0)),            # gate resident
            pl.BlockSpec((cout_tile, Cin), lambda n, c: (c, 0)),    # W tile (pipelined over c)
        ],
        out_specs=pl.BlockSpec((None, HW, cout_tile), lambda n, c: (n, 0, c)),
        compiler_params=pltpu.CompilerParams(
            dimension_semantics=("parallel", "parallel"),
            # footprint ~5 MB incl. double buffers; default scoped VMEM is enough
        ),
    )(x_cm, s, w)

    # (N, HW, Cout) -> (N, Cout, H, W): tiny (49 x 384) relayout in the wrapper.
    return jnp.transpose(out.reshape(N, H, W, Cout), (0, 3, 1, 2))


if __name__ == "__main__":
    key = jax.random.PRNGKey(0)
    k1, k2, k3 = jax.random.split(key, 3)

    # Shapes implied by the module's forward.
    N, Cin, H, W, Cout = 1, 2304, 7, 7, 384

    x700 = jax.random.normal(k1, (N, Cin, H, W), dtype=jnp.float32)
    x705 = jax.random.normal(k2, (1, Cin, 1, 1), dtype=jnp.float32)
    # Conv2d(2304, 384, 1x1, bias=False) weight, deterministic init
    weight = jax.random.normal(k3, (Cout, Cin, 1, 1), dtype=jnp.float32) * 0.02

    out = mul_conv1x1(x700, x705, weight)
    out = jax.block_until_ready(out)

    # Pure-JAX reference (broadcast mul + 1x1 conv as einsum)
    ref = jnp.einsum("nchw,oc->nohw", x700 * x705, weight.reshape(Cout, Cin))
    assert out.shape == (N, Cout, H, W)
    assert jnp.allclose(out, ref, atol=1e-3, rtol=1e-3)

    print("KERNEL_OK")
</pallas_src>

<mosaic_0001>
module attributes {stable_mosaic.version = 11 : i64} {
  func.func @_mul_conv1x1_kernel(%arg0: i32, %arg1: i32, %arg2: memref<1x2304x49xf32, #tpu.memory_space<vmem>>, %arg3: memref<1x2304xf32, #tpu.memory_space<vmem>>, %arg4: memref<128x2304xf32, #tpu.memory_space<vmem>>, %arg5: memref<1x49x128xf32, #tpu.memory_space<vmem>>) attributes {dimension_semantics = [#tpu.dimension_semantics<parallel>, #tpu.dimension_semantics<parallel>], iteration_bounds = array<i64: 1, 3>, scalar_prefetch = 0 : i64, scratch_operands = 0 : i64, tpu.core_type = #tpu.core_type<tc>, window_params = [{transform_indices = @transform_0, window_bounds = array<i64: 1, 2304, 49>}, {pipeline_mode = #tpu.pipeline_mode<synchronous>, transform_indices = @transform_1, window_bounds = array<i64: 1, 2304>}, {transform_indices = @transform_2, window_bounds = array<i64: 128, 2304>}, {transform_indices = @transform_3, window_bounds = array<i64: 1, 49, 128>}]} {
    %c0 = arith.constant 0 : index
    %c0_0 = arith.constant 0 : index
    %c0_1 = arith.constant 0 : index
    %0 = vector.load %arg2[%c0, %c0_0, %c0_1] : memref<1x2304x49xf32, #tpu.memory_space<vmem>>, vector<1x2304x49xf32>
    %1 = vector.shape_cast %0 : vector<1x2304x49xf32> to vector<2304x49xf32>
    %2 = tpu.transpose %1, [1, 0] : vector<2304x49xf32> -> vector<49x2304xf32>
    %c0_2 = arith.constant 0 : index
    %c0_3 = arith.constant 0 : index
    %3 = vector.load %arg3[%c0_2, %c0_3] : memref<1x2304xf32, #tpu.memory_space<vmem>>, vector<1x2304xf32>
    %4 = vector.broadcast %3 : vector<1x2304xf32> to vector<49x2304xf32>
    %5 = arith.mulf %2, %4 : vector<49x2304xf32>
    %c0_4 = arith.constant 0 : index
    %c0_5 = arith.constant 0 : index
    %6 = vector.load %arg4[%c0_4, %c0_5] : memref<128x2304xf32, #tpu.memory_space<vmem>>, vector<128x2304xf32>
    %cst = arith.constant dense<0.000000e+00> : vector<49x128xf32>
    %7 = tpu.matmul %5, %6, %cst {dimension_numbers = #tpu.dot_dimension_numbers<[1], [1], [0], [0], [0, 0, 1, 0], [], []>} : vector<49x2304xf32>, vector<128x2304xf32>, vector<49x128xf32> -> vector<49x128xf32>
    %c0_6 = arith.constant 0 : index
    %c0_7 = arith.constant 0 : index
    %c0_8 = arith.constant 0 : index
    %8 = vector.load %arg5[%c0_6, %c0_7, %c0_8] : memref<1x49x128xf32, #tpu.memory_space<vmem>>, vector<1x49x128xf32>
    %9 = vector.shape_cast %8 : vector<1x49x128xf32> to vector<49x128xf32>
    %10 = vector.shape_cast %7 : vector<49x128xf32> to vector<1x49x128xf32>
    tpu.vector_store %arg5[%c0_6, %c0_7, %c0_8], %10 {strides = array<i32>} : memref<1x49x128xf32, #tpu.memory_space<vmem>>, vector<1x49x128xf32>,
    return
  }
  func.func @transform_0(%arg0: i32, %arg1: i32) -> (i32, i32, i32) {
    %c0_i32 = arith.constant 0 : i32
    %c0_i32_0 = arith.constant 0 : i32
    %c0_i32_1 = arith.constant 0 : i32
    return %arg0, %c0_i32, %c0_i32_0 : i32, i32, i32
  }
  func.func @transform_1(%arg0: i32, %arg1: i32) -> (i32, i32) {
    %c0_i32 = arith.constant 0 : i32
    %c0_i32_0 = arith.constant 0 : i32
    %c0_i32_1 = arith.constant 0 : i32
    return %c0_i32, %c0_i32_0 : i32, i32
  }
  func.func @transform_2(%arg0: i32, %arg1: i32) -> (i32, i32) {
    %c0_i32 = arith.constant 0 : i32
    %c0_i32_0 = arith.constant 0 : i32
    return %arg1, %c0_i32 : i32, i32
  }
  func.func @transform_3(%arg0: i32, %arg1: i32) -> (i32, i32, i32) {
    %c0_i32 = arith.constant 0 : i32
    %c0_i32_0 = arith.constant 0 : i32
    return %arg0, %c0_i32, %arg1 : i32, i32, i32
  }
}

</mosaic_0001>

<bundles_post_ra>
// kernel: tpu_custom_call.1
= control target key start
LH: loop header
LB: loop body
LE: loop exit
PB: predicated region body
PF: predicated region fallthrough
CT: control target
= control target key end

     0   :  { %8 = vsyncpa [#allocation3], 0  ;;  %s4680_s0 = inlined_call_operand.vmem [shape: f32[1,2304,49], index: 0, kind: input, shape index: {}]   ;;  %s4681_s1 = inlined_call_operand.hbm [shape: f32[1,2304], index: 1, kind: input, shape index: {}]   ;;  %s4682_s2 = inlined_call_operand.hbm [shape: f32[384,2304], index: 2, kind: input, shape index: {}]   ;;  %s4683_s3 = inlined_call_operand.vmem [shape: f32[1,49,384], index: 3, kind: output, shape index: {}]  }
   0x1   :  { %9 = vsyncpa [#allocation5], 0 }
   0x2   :  { %11 = vsyncpa [#allocation5 + $0x1], 0  ;;  %s2936_s12 = smov 0   ;;  %s2938_s13 = smov 0  }
   0x3   :  { %s2940_s14 = smov 0   ;;  %s2942_s15 = smov 0  }
   0x4   :  { %s2944_s16 = smov 0   ;;  %s2946_s17 = smov 0  }
   0x5 LB: > { %s2682_s18 = sadd.s32 4294967295, %s2910_s17   ;;  %s83_s19 = sadd.s32 1, %s2898_s14  ;;  %s2910_s17 = sphi %s2946_s17, %s17_s17   ;;  %s2906_s16 = sphi %s2944_s16, %s4700_s16   ;;  %s2902_s15 = sphi %s2942_s15, %s4699_s15   ;;  %s2898_s14 = sphi %s2940_s14, %s4698_s14   ;;  %s2894_s13 = sphi %s2938_s13, %s4697_s13   ;;  %s2890_s12 = sphi %s2936_s12, %s4696_s12  }
   0x6   : > { %p90_p0 = scmp.ne.s32.totalorder %s2898_s14, %s2894_s13  ;;  %p91_p1 = scmp.eq.s32.totalorder %s2910_s17, 0 }
   0x7   : > { %p96_p2 = scmp.ne.s32.totalorder %s2894_s13, %s2890_s12  ;;  %p2970_p3 = scmp.eq.s32.totalorder %s2682_s18, 0 }
   0x8   : > { %p2974_p4 = por %p91_p1, %p90_p0  ;;  %p122_p5 = scmp.eq.s32.totalorder %s2682_s18, 2 }
   0x9   : > { %p2980_p6 = por %p2970_p3, %p96_p2  ;;  %p2684_p7 = scmp.ge.s32.totalorder %s2910_s17, 1 }
   0xa   : > { %p2985_p8 = por %p122_p5, %p90_p0  ;;  %p135_p9 = scmp.lt.s32.totalorder %s2910_s17, 4 }
   0xb   : > { %s4688_s22 = scalar_select %p2980_p6, 1, 0 }
   0xc   : > { %s4689_s23 = scalar_select %p2985_p8, 1, 0 }
   0xd   : > { %p2990_p10 = pnand %p2684_p7, %p135_p9  ;;  %s2912_s25 = smov [#allocation2]  }
   0xe   : > { %s156_s26 = sshll.u32 %s2912_s25, 4  ;;  %p2747_p12 = scmp.lt.s32.totalorder %s2910_s17, 3  ;;  %s157_s26 = int_to_ptr.vmem [resolvable:$true] %s156_s26 }
   0xf   : > { %s4690_s24 = scalar_select %p2990_p10, 1, 0 }
  0x10   : > { %p2738_p11 = pneg %p2990_p10  ;;  %s167_s27 = sand.u32 1, %s2898_s14  }
  0x11   : > { %p3002_p0 = pnand %p2747_p12, %p2974_p4  ;;  %s2813_s29 = scalar_lea.vmem %s157_s26, 288 }
  0x12   : > { %p2739_p13 = pnand %p2738_p11, %p2970_p3  ;;  %p2814_p2 = scmp.ne.s32.totalorder %s157_s26, %s2813_s29 }
  0x13   : > { %p2821_p9 = scmp.lt.s32.totalorder %s157_s26, %s157_s26  ;;  %p2822_p8 = scmp.lt.s32.totalorder %s2813_s29, %s2813_s29 }
  0x14   : > { %p2804_p1 = pneg %p2739_p13 }
  0x15   : > { %p2823_p6 = por %p2822_p8, %p2821_p9 }
  0x16   : > { %p2816_p5 = pnand %p2814_p2, %p2804_p1 }
  0x18   : > { %p2817_p7 = pneg %p2816_p5 }
  0x1a   : > { %p2824_p10 = pnand %p2823_p6, %p2817_p7 }
  0x1c   : > { %2827 = shalt.err (!%p2824_p10)
}
  0x1d   : > { %2741 = dma.hbm_to_vmem [thread:$0]  (!%p2739_p13), %s4681_s1, 288, %s157_s26, [#allocation3]  }
  0x1e   : > { %s26_s5 = sadd.s32 1, %s2906_s16  ;;  %s2728_s6 = smul.u32 2304, %s167_s27 }
  0x1f   : > { %p27_p4 = scmp.ge.s32.totalorder %s26_s5, 3  ;;  %s2729_s7 = smul.u32 36864, %s2906_s16 }
  0x20   : > { %s171_s11 = scalar_lea.vmem [#allocation4], %s2728_s6  ;;  %s168_s25 = scalar_lea.sflag [#allocation5], %s167_s27 }
  0x21   : > { %s4702_s5 = smov (%p27_p4, %s26_s5), 0  ;;  %s178_s10 = scalar_lea.hbm %s4682_s2, %s2729_s7 }
  0x22   : > { %s179_s12 = sshll.u32 %s171_s11, 4  ;;  %s80_s18 = ssub.s32 %s2906_s16, %s4702_s5  ;;  %s180_s12 = int_to_ptr.vmem [resolvable:$true] %s179_s12 }
  0x23   : > { %p3018_p6 = scmp.eq.s32.totalorder %s80_s18, 0  ;;  %p2830_p8 = pneg %p3002_p0 }
  0x24   : > { %s2841_s26 = scalar_lea.vmem %s180_s12, 36864  ;;  %s2913_s29 = smov [#allocation4]  }
  0x25   : > { %p2842_p10 = scmp.ne.s32.totalorder %s180_s12, %s2841_s26  ;;  %s2846_s30 = sshll.u32 %s2913_s29, 4  ;;  %s2847_s30 = int_to_ptr.vmem [resolvable:$false] %s2846_s30 }
  0x26   : > { %s2848_s4 = scalar_lea.vmem %s2847_s30, 73728  ;;  %p2849_p13 = scmp.lt.s32.totalorder %s180_s12, %s2847_s30 }
  0x27   : > { %p2844_p11 = pnand %p2842_p10, %p2830_p8  ;;  %p2850_p1 = scmp.lt.s32.totalorder %s2848_s4, %s2841_s26 }
  0x29   : > { %p2845_p12 = pneg %p2844_p11  ;;  %p2851_p2 = por %p2850_p1, %p2849_p13 }
  0x2b   : > { %p2852_p5 = pnand %p2851_p2, %p2845_p12 }
  0x2d   : > { %2855 = shalt.err (!%p2852_p5)
}
  0x2e   : > { %s2914_s6 = smov 2304   ;;  %s2915_s27 = smov 144  }
  0x2f   : > { %2745 = dma.hbm_to_vmem [thread:$0]  (!%p3002_p0), %s178_s10, 36864, %s180_s12, %s168_s25, %s2914_s6, %s2914_s6, %s2915_s27  }
  0x30   : > { %s3031_s7 = scalar_select %p3018_p6, %s2898_s14, %s83_s19  }
  0x31   : > { %p4693_p7 = scmp.ne.s32.totalorder %s4690_s24, 0 }
  0x33   : > { %191 = sbr.rel (%p4693_p7) target bundleno = 931 (0x3a3), region = 32 }
  0x38   : > { %2881 = dma.done.wait (%p2970_p3), [#allocation3], 288  }
  0x39   : > { %2883 = vsyncadd (%p2970_p3), [#allocation3], 4294967008  ;;  %s3040_s8 = sand.u32 1, %s2894_s13   ;;  %p4694_p0 = scmp.ne.s32.totalorder %s4688_s22, 0 }
  0x3a   : > { %s2730_s28 = smul.u32 2304, %s3040_s8  ;;  %s198_s9 = scalar_lea.sflag [#allocation5], %s3040_s8 }
  0x3c   : > { %s3044_s10 = scalar_lea.vmem [#allocation4], %s2730_s28 }
  0x3d   : > { %2885 = dma.done.wait (%p4694_p0), %s198_s9, 36864  }
  0x3e   : > { %2887 = vsyncadd (%p4694_p0), %s198_s9, 4294930432  ;;  %v234_v0 = vld [vmem:[%s4680_s0] sm:$0xff]  ;;  %v235_v2 = vld [vmem:[%s4680_s0 + $0x8] sm:$0xff]  ;;  %p4695_p3 = scmp.ne.s32.totalorder %s4689_s23, 0 }
  0x3f   : > { %v250_v1 = vld [vmem:[%s4680_s0 + $0x80] sm:$0xff]  ;;  %522 = vxpose.xlu0.b32.start [1/16] (narrow) %v234_v0, 56  ;;  %v251_v3 = vld [vmem:[%s4680_s0 + $0x88] sm:$0xff]  ;;  %v236_v4 = vld [vmem:[%s4680_s0 + $0x10] sm:$0xff] }
  0x40   : > { %554 = vxpose.xlu1.b32.start [1/16] (narrow) %v250_v1, 56  ;;  %v252_v5 = vld [vmem:[%s4680_s0 + $0x90] sm:$0xff]  ;;  %v237_v6 = vld [vmem:[%s4680_s0 + $0x18] sm:$0xff]  ;;  %v238_v8 = vld [vmem:[%s4680_s0 + $0x20] sm:$0xff] }
  0x41   : > { %v253_v7 = vld [vmem:[%s4680_s0 + $0x98] sm:$0xff]  ;;  %v254_v9 = vld [vmem:[%s4680_s0 + $0xa0] sm:$0xff]  ;;  %v239_v10 = vld [vmem:[%s4680_s0 + $0x28] sm:$0xff] }
  0x42   : > { %v255_v11 = vld [vmem:[%s4680_s0 + $0xa8] sm:$0xff]  ;;  %v240_v12 = vld [vmem:[%s4680_s0 + $0x30] sm:$0xff]  ;;  %v241_v14 = vld [vmem:[%s4680_s0 + $0x38] sm:$0xff] }
  0x43   : > { %523 = vxpose.xlu0.b32.cont [2/16] (narrow) %v235_v2, 56  ;;  %v256_v13 = vld [vmem:[%s4680_s0 + $0xb0] sm:$0xff]  ;;  %v257_v15 = vld [vmem:[%s4680_s0 + $0xb8] sm:$0xff]  ;;  %v242_v16 = vld [vmem:[%s4680_s0 + $0x40] sm:$0xff] }
  0x44   : > { %555 = vxpose.xlu1.b32.cont [2/16] (narrow) %v251_v3, 56  ;;  %v258_v17 = vld [vmem:[%s4680_s0 + $0xc0] sm:$0xff]  ;;  %v243_v18 = vld [vmem:[%s4680_s0 + $0x48] sm:$0xff]  ;;  %v244_v20 = vld [vmem:[%s4680_s0 + $0x50] sm:$0xff] }
  0x45   : > { %v259_v19 = vld [vmem:[%s4680_s0 + $0xc8] sm:$0xff]  ;;  %v260_v21 = vld [vmem:[%s4680_s0 + $0xd0] sm:$0xff]  ;;  %v245_v22 = vld [vmem:[%s4680_s0 + $0x58] sm:$0xff] }
  0x46   : > { %v261_v23 = vld [vmem:[%s4680_s0 + $0xd8] sm:$0xff]  ;;  %v246_v24 = vld [vmem:[%s4680_s0 + $0x60] sm:$0xff]  ;;  %v247_v26 = vld [vmem:[%s4680_s0 + $0x68] sm:$0xff] }
  0x47   : > { %524 = vxpose.xlu0.b32.cont [3/16] (narrow) %v236_v4, 56  ;;  %v262_v25 = vld [vmem:[%s4680_s0 + $0xe0] sm:$0xff]  ;;  %v263_v27 = vld [vmem:[%s4680_s0 + $0xe8] sm:$0xff]  ;;  %v248_v28 = vld [vmem:[%s4680_s0 + $0x70] sm:$0xff] }
  0x48   : > { %556 = vxpose.xlu1.b32.cont [3/16] (narrow) %v252_v5, 56  ;;  %v264_v29 = vld [vmem:[%s4680_s0 + $0xf0] sm:$0xff]  ;;  %v249_v30 = vld [vmem:[%s4680_s0 + $0x78] sm:$0xff]  ;;  %v266_v33 = vld [vmem:[%s4680_s0 + $0x100] sm:$0xff] }
  0x49   : > { %v265_v31 = vld [vmem:[%s4680_s0 + $0xf8] sm:$0xff]  ;;  %v1591_v32 = vld [vmem:[%s3044_s10 + $0x878] sm:$0xff]  ;;  %v282_v34 = vld [vmem:[%s4680_s0 + $0x180] sm:$0xff] }
  0x4a   : > { %1608 = vmatprep.subr.mxu0 %v1591_v32  ;;  %v1590_v35 = vld [vmem:[%s3044_s10 + $0x870] sm:$0xff]  ;;  %v1573_v36 = vld [vmem:[%s3044_s10 + $0x7e8] sm:$0xff]  ;;  %v1572_v39 = vld [vmem:[%s3044_s10 + $0x7e0] sm:$0xff] }
  0x4b   : > { %525 = vxpose.xlu0.b32.cont [4/16] (narrow) %v237_v6, 56  ;;  %v267_v37 = vld [vmem:[%s4680_s0 + $0x108] sm:$0xff]  ;;  %1609 = vmatpush1.xpose.msra.mxu0 %v1590_v35  ;;  %v268_v41 = vld [vmem:[%s4680_s0 + $0x110] sm:$0xff]  ;;  %v1537_v44 = vld [vmem:[%s3044_s10 + $0x6c8] sm:$0xff] }
  0x4c   : > { %557 = vxpose.xlu1.b32.cont [4/16] (narrow) %v253_v7, 56  ;;  %v283_v38 = vld [vmem:[%s4680_s0 + $0x188] sm:$0xff]  ;;  %1610 = vmatprep.subr.mxu0 %v1573_v36  ;;  %v284_v42 = vld [vmem:[%s4680_s0 + $0x190] sm:$0xff]  ;;  %v269_v45 = vld [vmem:[%s4680_s0 + $0x118] sm:$0xff] }
  0x4d   : > { %v1555_v40 = vld [vmem:[%s3044_s10 + $0x758] sm:$0xff]  ;;  %v1554_v43 = vld [vmem:[%s3044_s10 + $0x750] sm:$0xff]  ;;  %v285_v46 = vld [vmem:[%s4680_s0 + $0x198] sm:$0xff] }
  0x4e   : > { %v1536_v47 = vld [vmem:[%s3044_s10 + $0x6c0] sm:$0xff]  ;;  %v1519_v48 = vld [vmem:[%s3044_s10 + $0x638] sm:$0xff]  ;;  %v270_v49 = vld [vmem:[%s4680_s0 + $0x120] sm:$0xff] }
  0x4f   : > { %526 = vxpose.xlu0.b32.cont [5/16] (narrow) %v238_v8, 56  ;;  %1611 = vmatpush1.xpose.msra.mxu0 %v1572_v39  ;;  %v286_v50 = vld [vmem:[%s4680_s0 + $0x1a0] sm:$0xff]  ;;  %v271_v53 = vld [vmem:[%s4680_s0 + $0x128] sm:$0xff]  ;;  %v1500_v55 = vld [vmem:[%s3044_s10 + $0x5a0] sm:$0xff] }
  0x50   : > { %558 = vxpose.xlu1.b32.cont [5/16] (narrow) %v254_v9, 56  ;;  %1612 = vmatprep.subr.mxu0 %v1555_v40  ;;  %v1518_v51 = vld [vmem:[%s3044_s10 + $0x630] sm:$0xff]  ;;  %v1501_v52 = vld [vmem:[%s3044_s10 + $0x5a8] sm:$0xff]  ;;  %v1483_v56 = vld [vmem:[%s3044_s10 + $0x518] sm:$0xff] }
  0x51   : > { %v287_v54 = vld [vmem:[%s4680_s0 + $0x1a8] sm:$0xff]  ;;  %v272_v57 = vld [vmem:[%s4680_s0 + $0x130] sm:$0xff]  ;;  %v1465_v60 = vld [vmem:[%s3044_s10 + $0x488] sm:$0xff] }
  0x52   : > { %v288_v58 = vld [vmem:[%s4680_s0 + $0x1b0] sm:$0xff]  ;;  %v1482_v59 = vld [vmem:[%s3044_s10 + $0x510] sm:$0xff]  ;;  %v273_v61 = vld [vmem:[%s4680_s0 + $0x138] sm:$0xff] }
  0x53   : > { %527 = vxpose.xlu0.b32.cont [6/16] (narrow) %v239_v10, 56  ;;  %1613 = vmatpush1.xpose.msra.mxu0 %v1554_v43  ;;  %v289_v62 = vld [vmem:[%s4680_s0 + $0x1b8] sm:$0xff]  ;;  %v1447_v0 = vld [vmem:[%s3044_s10 + $0x3f8] sm:$0xff]  ;;  %v274_v1 = vld [vmem:[%s4680_s0 + $0x140] sm:$0xff] }
  0x54   : > { %559 = vxpose.xlu1.b32.cont [6/16] (narrow) %v255_v11, 56  ;;  %1614 = vmatprep.subr.mxu0 %v1537_v44  ;;  %v1464_v63 = vld [vmem:[%s3044_s10 + $0x480] sm:$0xff]  ;;  %v290_v2 = vld [vmem:[%s4680_s0 + $0x1c0] sm:$0xff]  ;;  %v275_v5 = vld [vmem:[%s4680_s0 + $0x148] sm:$0xff] }
  0x55   : > { %v1446_v3 = vld [vmem:[%s3044_s10 + $0x3f0] sm:$0xff]  ;;  %v1429_v4 = vld [vmem:[%s3044_s10 + $0x368] sm:$0xff]  ;;  %v1428_v7 = vld [vmem:[%s3044_s10 + $0x360] sm:$0xff] }
  0x56   : > { %v291_v6 = vld [vmem:[%s4680_s0 + $0x1c8] sm:$0xff]  ;;  %v276_v9 = vld [vmem:[%s4680_s0 + $0x150] sm:$0xff]  ;;  %v297_v32 = vld [vmem:[%s4680_s0 + $0x1f8] sm:$0xff] }
  0x57   : > { %528 = vxpose.xlu0.b32.cont [7/16] (narrow) %v240_v12, 56  ;;  %1615 = vmatpush1.xpose.msra.mxu0 %v1536_v47  ;;  %v1411_v8 = vld [vmem:[%s3044_s10 + $0x2d8] sm:$0xff]  ;;  %v1410_v11 = vld [vmem:[%s3044_s10 + $0x2d0] sm:$0xff]  ;;  %v1393_v12 = vld [vmem:[%s3044_s10 + $0x248] sm:$0xff] }
  0x58   : > { %560 = vxpose.xlu1.b32.cont [7/16] (narrow) %v256_v13, 56  ;;  %1616 = vmatprep.subr.mxu0 %v1519_v48  ;;  %v292_v10 = vld [vmem:[%s4680_s0 + $0x1d0] sm:$0xff]  ;;  %v277_v13 = vld [vmem:[%s4680_s0 + $0x158] sm:$0xff]  ;;  %v3280_v36 = vld [vmem:[#allocation2] sm:$0xff] }
  0x59   : > { %v1320_v39 = vld [vmem:[%s3044_s10] sm:$0xff]  ;;  %v1575_v40 = vld [vmem:[%s3044_s10 + $0x7f8] sm:$0xff]  ;;  %v314_v44 = vld [vmem:[%s4680_s0 + $0x280] sm:$0xff] }
  0x5a   : > { %v1595_v47 = vld [vmem:[%s3044_s10 + $0x898] sm:$0xff] }
  0x5b   : > { %529 = vxpose.xlu0.b32.cont [8/16] (narrow) %v241_v14, 56  ;;  %1617 = vmatpush1.xpose.msra.mxu0 %v1518_v51  ;;  %v293_v14 = vld [vmem:[%s4680_s0 + $0x1d8] sm:$0xff]  ;;  %v1594_v51 = vld [vmem:[%s3044_s10 + $0x890] sm:$0xff] }
  0x5c   : > { %561 = vxpose.xlu1.b32.cont [8/16] (narrow) %v257_v15, 56  ;;  %1618 = vmatprep.subr.mxu0 %v1501_v52  ;;  %v1392_v15 = vld [vmem:[%s3044_s10 + $0x240] sm:$0xff]  ;;  %v299_v52 = vld [vmem:[%s4680_s0 + $0x208] sm:$0xff] }
  0x5f   : > { %530 = vxpose.xlu0.b32.cont [9/16] (narrow) %v242_v16, 56  ;;  %1619 = vmatpush1.xpose.msra.mxu0 %v1500_v55  ;;  %v1375_v16 = vld [vmem:[%s3044_s10 + $0x1b8] sm:$0xff]  ;;  %v1577_v55 = vld [vmem:[%s3044_s10 + $0x808] sm:$0xff] }
  0x60   : > { %562 = vxpose.xlu1.b32.cont [9/16] (narrow) %v258_v17, 56  ;;  %1620 = vmatprep.subr.mxu0 %v1483_v56  ;;  %v278_v17 = vld [vmem:[%s4680_s0 + $0x160] sm:$0xff]  ;;  %v1539_v56 = vld [vmem:[%s3044_s10 + $0x6d8] sm:$0xff] }
  0x63   : > { %531 = vxpose.xlu0.b32.cont [10/16] (narrow) %v243_v18, 56  ;;  %1621 = vmatpush1.xpose.msra.mxu0 %v1482_v59  ;;  %v294_v18 = vld [vmem:[%s4680_s0 + $0x1e0] sm:$0xff]  ;;  %v316_v59 = vld [vmem:[%s4680_s0 + $0x290] sm:$0xff] }
  0x64   : > { %563 = vxpose.xlu1.b32.cont [10/16] (narrow) %v259_v19, 56  ;;  %1622 = vmatprep.subr.mxu0 %v1465_v60  ;;  %v1374_v19 = vld [vmem:[%s3044_s10 + $0x1b0] sm:$0xff] }
  0x65   : > { %v1538_v60 = vld [vmem:[%s3044_s10 + $0x6d0] sm:$0xff] }
  0x67   : > { %532 = vxpose.xlu0.b32.cont [11/16] (narrow) %v244_v20, 56  ;;  %1623 = vmatpush1.xpose.msra.mxu0 %v1464_v63  ;;  %v1357_v20 = vld [vmem:[%s3044_s10 + $0x128] sm:$0xff] }
  0x68   : > { %564 = vxpose.xlu1.b32.cont [11/16] (narrow) %v260_v21, 56  ;;  %1624 = vmatprep.subr.mxu0 %v1447_v0  ;;  %v279_v21 = vld [vmem:[%s4680_s0 + $0x168] sm:$0xff] }
  0x69   : > { %v1558_v0 = vld [vmem:[%s3044_s10 + $0x770] sm:$0xff] }
  0x6b   : > { %533 = vxpose.xlu0.b32.cont [12/16] (narrow) %v245_v22, 56  ;;  %1625 = vmatpush1.xpose.msra.mxu0 %v1446_v3  ;;  %v295_v22 = vld [vmem:[%s4680_s0 + $0x1e8] sm:$0xff]  ;;  %v317_v3 = vld [vmem:[%s4680_s0 + $0x298] sm:$0xff] }
  0x6c   : > { %565 = vxpose.xlu1.b32.cont [12/16] (narrow) %v261_v23, 56  ;;  %1626 = vmatprep.subr.mxu0 %v1429_v4  ;;  %v1356_v23 = vld [vmem:[%s3044_s10 + $0x120] sm:$0xff] }
  0x6f   : > { %534 = vxpose.xlu0.b32.cont [13/16] (narrow) %v246_v24, 56  ;;  %1627 = vmatpush1.xpose.msra.mxu0 %v1428_v7  ;;  %v1339_v24 = vld [vmem:[%s3044_s10 + $0x98] sm:$0xff]  ;;  %v1541_v7 = vld [vmem:[%s3044_s10 + $0x6e8] sm:$0xff] }
  0x70   : > { %566 = vxpose.xlu1.b32.cont [13/16] (narrow) %v262_v25, 56  ;;  %1628 = vmatprep.subr.mxu0 %v1411_v8  ;;  %v280_v25 = vld [vmem:[%s4680_s0 + $0x170] sm:$0xff] }
  0x71   : > { %v1503_v8 = vld [vmem:[%s3044_s10 + $0x5b8] sm:$0xff] }
  0x73   : > { %535 = vxpose.xlu0.b32.cont [14/16] (narrow) %v247_v26, 56  ;;  %1629 = vmatpush1.xpose.msra.mxu0 %v1410_v11  ;;  %v296_v26 = vld [vmem:[%s4680_s0 + $0x1f0] sm:$0xff] }
  0x74   : > { %567 = vxpose.xlu1.b32.cont [14/16] (narrow) %v263_v27, 56  ;;  %1630 = vmatprep.subr.mxu0 %v1393_v12  ;;  %v1104_v27 = vlaneseq  ;;  %v302_v12 = vld [vmem:[%s4680_s0 + $0x220] sm:$0xff] }
  0x77   : > { %536 = vxpose.xlu0.b32.cont [15/16] (narrow) %v248_v28, 56  ;;  %1631 = vmatpush1.xpose.msra.mxu0 %v1392_v15  ;;  %v281_v28 = vld [vmem:[%s4680_s0 + $0x178] sm:$0xff]  ;;  %v1502_v15 = vld [vmem:[%s3044_s10 + $0x5b0] sm:$0xff] }
  0x78   : > { %568 = vxpose.xlu1.b32.cont [15/16] (narrow) %v264_v29, 56  ;;  %1632 = vmatprep.subr.mxu0 %v1375_v16  ;;  %v1338_v29 = vld [vmem:[%s3044_s10 + $0x90] sm:$0xff] }
  0x7b   : > { %537 = vxpose.xlu0.b32.end [16/16] (narrow) %v249_v30, 56  ;;  %1633 = vmatpush1.xpose.msra.mxu0 %v1374_v19  ;;  %v1593_v30 = vld [vmem:[%s3044_s10 + $0x888] sm:$0xff] }
  0x7c   : > { %569 = vxpose.xlu1.b32.end [16/16] (narrow) %v265_v31, 56  ;;  %1634 = vmatprep.subr.mxu0 %v1357_v20  ;;  %v3270_v31 = vshrl.u32 %v1104_v27, 7  ;;  %v1522_v20 = vld [vmem:[%s3044_s10 + $0x650] sm:$0xff]  ;;  %v1505_v27 = vld [vmem:[%s3044_s10 + $0x5c8] sm:$0xff] }
  0x7d   : > { %1708 = vmatprep.subr.mxu1 %v1593_v30  ;;  %v1504_v30 = vld [vmem:[%s3044_s10 + $0x5c0] sm:$0xff] }
  0x7e   : > { %v3278_v35 = vsub.s32 1, %v3270_v31 }
  0x7f   : > { %586 = vxpose.xlu0.b32.start [1/16] (narrow) %v266_v33, 56  ;;  %1635 = vmatpush1.xpose.msra.mxu0 %v1356_v23  ;;  %v1592_v33 = vld [vmem:[%s3044_s10 + $0x880] sm:$0xff]  ;;  %v319_v23 = vld [vmem:[%s4680_s0 + $0x2a8] sm:$0xff] }
  0x80   : > { %618 = vxpose.xlu1.b32.start [1/16] (narrow) %v282_v34, 56  ;;  %1636 = vmatprep.subr.mxu0 %v1339_v24  ;;  %v1321_v34 = vld [vmem:[%s3044_s10 + $0x8] sm:$0xff]  ;;  %v3292_v43 = vrot.slane %v3280_v36, %v3278_v35 }
  0x81   : > { %1709 = vmatpush1.xpose.msra.mxu1 %v1592_v33  ;;  %v304_v33 = vld [vmem:[%s4680_s0 + $0x230] sm:$0xff] }
  0x82   : > { %1710 = vmatprep.subr.mxu1 %v1575_v40 }
  0x83   : > { %587 = vxpose.xlu0.b32.cont [2/16] (narrow) %v267_v37, 56  ;;  %1637 = vmatpush1.xpose.msra.mxu0 %v1338_v29  ;;  %v3283_v37 = vsub.s32 0, %v3270_v31 }
  0x84   : > { %619 = vxpose.xlu1.b32.cont [2/16] (narrow) %v283_v38, 56  ;;  %1638 = vmatprep.subr.mxu0 %v1321_v34  ;;  %v298_v38 = vld [vmem:[%s4680_s0 + $0x200] sm:$0xff]  ;;  %v320_v34 = vld [vmem:[%s4680_s0 + $0x2b0] sm:$0xff] }
  0x87   : > { %588 = vxpose.xlu0.b32.cont [3/16] (narrow) %v268_v41, 56  ;;  %1639 = vmatpush1.xpose.msra.mxu0 %v1320_v39  ;;  %v1466_v39 = vld [vmem:[%s3044_s10 + $0x490] sm:$0xff] }
  0x88   : > { %620 = vxpose.xlu1.b32.cont [3/16] (narrow) %v284_v42, 56  ;;  %1808 = vmatprep.subr.mxu0 %v1595_v47 }
  0x8b   : > { %589 = vxpose.xlu0.b32.cont [4/16] (narrow) %v269_v45, 56  ;;  %v1574_v45 = vld [vmem:[%s3044_s10 + $0x7f0] sm:$0xff] }
  0x8c   : > { %621 = vxpose.xlu1.b32.cont [4/16] (narrow) %v285_v46, 56  ;;  %v3300_v46 = vrot.slane %v3280_v36, %v3283_v37  ;;  %1711 = vmatpush1.xpose.msra.mxu1 %v1574_v45  ;;  %v1486_v45 = vld [vmem:[%s3044_s10 + $0x530] sm:$0xff] }
  0x8f   : > { %590 = vxpose.xlu0.b32.cont [5/16] (narrow) %v270_v49, 56 }
  0x90   : > { %622 = vxpose.xlu1.b32.cont [5/16] (narrow) %v286_v50, 56  ;;  %v1557_v50 = vld [vmem:[%s3044_s10 + $0x768] sm:$0xff] }
  0x91   : > { %1712 = vmatprep.subr.mxu1 %v1557_v50 }
  0x93   : > { %591 = vxpose.xlu0.b32.cont [6/16] (narrow) %v271_v53, 56  ;;  %v315_v53 = vld [vmem:[%s4680_s0 + $0x288] sm:$0xff] }
  0x94   : > { %623 = vxpose.xlu1.b32.cont [6/16] (narrow) %v287_v54, 56  ;;  %v1556_v54 = vld [vmem:[%s3044_s10 + $0x760] sm:$0xff] }
  0x95   : > { %1713 = vmatpush1.xpose.msra.mxu1 %v1556_v54  ;;  %v1431_v54 = vld [vmem:[%s3044_s10 + $0x378] sm:$0xff] }
  0x96   : > { %1714 = vmatprep.subr.mxu1 %v1539_v56  ;;  %v1468_v56 = vld [vmem:[%s3044_s10 + $0x4a0] sm:$0xff] }
  0x97   : > { %592 = vxpose.xlu0.b32.cont [7/16] (narrow) %v272_v57, 56  ;;  %v1576_v57 = vld [vmem:[%s3044_s10 + $0x800] sm:$0xff] }
  0x98   : > { %624 = vxpose.xlu1.b32.cont [7/16] (narrow) %v288_v58, 56  ;;  %v300_v58 = vld [vmem:[%s4680_s0 + $0x210] sm:$0xff] }
  0x99   : > { %1715 = vmatpush1.xpose.msra.mxu1 %v1538_v60  ;;  %v1430_v60 = vld [vmem:[%s3044_s10 + $0x370] sm:$0xff] }
  0x9b   : > { %593 = vxpose.xlu0.b32.cont [8/16] (narrow) %v273_v61, 56  ;;  %v1559_v61 = vld [vmem:[%s3044_s10 + $0x778] sm:$0xff] }
  0x9c   : > { %625 = vxpose.xlu1.b32.cont [8/16] (narrow) %v289_v62, 56  ;;  %v1521_v62 = vld [vmem:[%s3044_s10 + $0x648] sm:$0xff] }
  0x9d   : > { %1716 = vmatprep.subr.mxu1 %v1521_v62 }
  0x9f   : > { %594 = vxpose.xlu0.b32.cont [9/16] (narrow) %v274_v1, 56 }
  0xa0   : > { %626 = vxpose.xlu1.b32.cont [9/16] (narrow) %v290_v2, 56  ;;  %v301_v2 = vld [vmem:[%s4680_s0 + $0x218] sm:$0xff] }
  0xa3   : > { %595 = vxpose.xlu0.b32.cont [10/16] (narrow) %v275_v5, 56  ;;  %v1520_v5 = vld [vmem:[%s3044_s10 + $0x640] sm:$0xff] }
  0xa4   : > { %627 = vxpose.xlu1.b32.cont [10/16] (narrow) %v291_v6, 56  ;;  %1717 = vmatpush1.xpose.msra.mxu1 %v1520_v5  ;;  %v1432_v5 = vld [vmem:[%s3044_s10 + $0x380] sm:$0xff] }
  0xa5   : > { %1718 = vmatprep.subr.mxu1 %v1503_v8  ;;  %v1394_v8 = vld [vmem:[%s3044_s10 + $0x250] sm:$0xff] }
  0xa7   : > { %596 = vxpose.xlu0.b32.cont [11/16] (narrow) %v276_v9, 56 }
  0xa8   : > { %628 = vxpose.xlu1.b32.cont [11/16] (narrow) %v292_v10, 56  ;;  %v1540_v10 = vld [vmem:[%s3044_s10 + $0x6e0] sm:$0xff]  ;;  %1719 = vmatpush1.xpose.msra.mxu1 %v1502_v15  ;;  %v1397_v15 = vld [vmem:[%s3044_s10 + $0x268] sm:$0xff] }
  0xab   : > { %597 = vxpose.xlu0.b32.cont [12/16] (narrow) %v277_v13, 56  ;;  %v318_v13 = vld [vmem:[%s4680_s0 + $0x2a0] sm:$0xff] }
  0xac   : > { %629 = vxpose.xlu1.b32.cont [12/16] (narrow) %v293_v14, 56 }
  0xaf   : > { %598 = vxpose.xlu0.b32.cont [13/16] (narrow) %v278_v17, 56  ;;  %v1523_v17 = vld [vmem:[%s3044_s10 + $0x658] sm:$0xff] }
  0xb0   : > { %630 = vxpose.xlu1.b32.cont [13/16] (narrow) %v294_v18, 56  ;;  %v1485_v18 = vld [vmem:[%s3044_s10 + $0x528] sm:$0xff] }
  0xb1   : > { %1720 = vmatprep.subr.mxu1 %v1485_v18  ;;  %v310_v18 = vld [vmem:[%s4680_s0 + $0x260] sm:$0xff] }
  0xb3   : > { %599 = vxpose.xlu0.b32.cont [14/16] (narrow) %v279_v21, 56 }
  0xb4   : > { %631 = vxpose.xlu1.b32.cont [14/16] (narrow) %v295_v22, 56  ;;  %v303_v22 = vld [vmem:[%s4680_s0 + $0x228] sm:$0xff] }
  0xb7   : > { %600 = vxpose.xlu0.b32.cont [15/16] (narrow) %v280_v25, 56  ;;  %v1484_v25 = vld [vmem:[%s3044_s10 + $0x520] sm:$0xff] }
  0xb8   : > { %632 = vxpose.xlu1.b32.cont [15/16] (narrow) %v296_v26, 56  ;;  %1721 = vmatpush1.xpose.msra.mxu1 %v1484_v25  ;;  %v327_v25 = vld [vmem:[%s4680_s0 + $0x2e8] sm:$0xff] }
  0xbb   : > { %601 = vxpose.xlu0.b32.end [16/16] (narrow) %v281_v28, 56  ;;  %v538_v42 = vpop.trf.xlu0  ;;  %v1467_v28 = vld [vmem:[%s3044_s10 + $0x498] sm:$0xff] }
  0xbc   : > { %633 = vxpose.xlu1.b32.end [16/16] (narrow) %v297_v32, 56  ;;  %v570_v41 = vpop.trf.xlu1  ;;  %v1194_v49 = vmul.f32 %v3300_v46, %v538_v42  ;;  %1722 = vmatprep.subr.mxu1 %v1467_v28  ;;  %v1449_v42 = vld [vmem:[%s3044_s10 + $0x408] sm:$0xff]  ;;  %v1323_v28 = vld [vmem:[%s3044_s10 + $0x18] sm:$0xff] }
  0xbd   : > { %v1195_v48 = vmul.f32 %v3292_v43, %v570_v41  ;;  %1723 = vmatpush1.xpose.msra.mxu1 %v1466_v39  ;;  %v1487_v41 = vld [vmem:[%s3044_s10 + $0x538] sm:$0xff] }
  0xbe   : > { %1724 = vmatprep.subr.mxu1 %v1449_v42  ;;  %v1343_v39 = vld [vmem:[%s3044_s10 + $0xb8] sm:$0xff]  ;;  %v313_v42 = vld [vmem:[%s4680_s0 + $0x278] sm:$0xff] }
  0xbf   : > { %650 = vxpose.xlu0.b32.start [1/16] (narrow) %v298_v38, 56  ;;  %1672 = vmatprep.mubr.f32.mxu0 %v1195_v48  ;;  %v539_v1 = vpop.trf.xlu0  ;;  %v305_v48 = vld [vmem:[%s4680_s0 + $0x238] sm:$0xff] }
  0xc0   : > { %682 = vxpose.xlu1.b32.start [1/16] (narrow) %v314_v44, 56  ;;  %1673 = vmatmul.mubr.f32.vlgmr.msra.gmra.mxu0 %v1194_v49  ;;  %v571_v63 = vpop.trf.xlu1  ;;  %v1212_v6 = vmul.f32 %v3300_v46, %v539_v1  ;;  %v321_v49 = vld [vmem:[%s4680_s0 + $0x2b8] sm:$0xff]  ;;  %v1450_v1 = vld [vmem:[%s3044_s10 + $0x410] sm:$0xff] }
  0xc1   : > { %1809 = vmatpush1.xpose.msra.mxu0 %v1594_v51  ;;  %v1213_v4 = vmul.f32 %v3292_v43, %v571_v63  ;;  %v1448_v51 = vld [vmem:[%s3044_s10 + $0x400] sm:$0xff]  ;;  %v1451_v63 = vld [vmem:[%s3044_s10 + $0x418] sm:$0xff] }
  0xc2   : > { %1810 = vmatprep.subr.mxu0 %v1577_v55  ;;  %1725 = vmatpush1.xpose.msra.mxu1 %v1448_v51  ;;  %v1324_v51 = vld [vmem:[%s3044_s10 + $0x20] sm:$0xff] }
  0xc3   : > { %651 = vxpose.xlu0.b32.cont [2/16] (narrow) %v299_v52, 56  ;;  %1677 = vmatprep.mubr.f32.mxu0 %v1213_v4  ;;  %v540_v11 = vpop.trf.xlu0  ;;  %v1395_v4 = vld [vmem:[%s3044_s10 + $0x258] sm:$0xff] }
  0xc4   : > { %683 = vxpose.xlu1.b32.cont [2/16] (narrow) %v315_v53, 56  ;;  %v572_v9 = vpop.trf.xlu1  ;;  %v1230_v16 = vmul.f32 %v3300_v46, %v540_v11  ;;  %1678 = vmatmul.mubr.f32.gmra.mxu0 %v1212_v6  ;;  %v1469_v53 = vld [vmem:[%s3044_s10 + $0x4a8] sm:$0xff]  ;;  %v308_v6 = vld [vmem:[%s4680_s0 + $0x250] sm:$0xff]  ;;  %v1414_v11 = vld [vmem:[%s3044_s10 + $0x2f0] sm:$0xff] }
  0xc5   : > { %1811 = vmatpush1.xpose.msra.mxu0 %v1576_v57  ;;  %v1231_v14 = vmul.f32 %v3292_v43, %v572_v9  ;;  %v306_v57 = vld [vmem:[%s4680_s0 + $0x240] sm:$0xff]  ;;  %1726 = vmatprep.subr.mxu1 %v1431_v54  ;;  %v1415_v9 = vld [vmem:[%s3044_s10 + $0x2f8] sm:$0xff] }
  0xc6   : > { %1812 = vmatprep.subr.mxu0 %v1559_v61  ;;  %1727 = vmatpush1.xpose.msra.mxu1 %v1430_v60  ;;  %v1579_v60 = vld [vmem:[%s3044_s10 + $0x818] sm:$0xff] }
  0xc7   : > { %652 = vxpose.xlu0.b32.cont [3/16] (narrow) %v300_v58, 56  ;;  %1682 = vmatprep.mubr.f32.mxu0 %v1231_v14  ;;  %v541_v21 = vpop.trf.xlu0  ;;  %v322_v58 = vld [vmem:[%s4680_s0 + $0x2c0] sm:$0xff]  ;;  %v1376_v14 = vld [vmem:[%s3044_s10 + $0x1c0] sm:$0xff] }
  0xc8   : > { %684 = vxpose.xlu1.b32.cont [3/16] (narrow) %v316_v59, 56  ;;  %v573_v19 = vpop.trf.xlu1  ;;  %v1248_v26 = vmul.f32 %v3300_v46, %v541_v21  ;;  %1683 = vmatmul.mubr.f32.gmra.mxu0 %v1230_v16  ;;  %v1359_v16 = vld [vmem:[%s3044_s10 + $0x138] sm:$0xff] }
  0xc9   : > { %1813 = vmatpush1.xpose.msra.mxu0 %v1558_v0  ;;  %v1249_v24 = vmul.f32 %v3292_v43, %v573_v19  ;;  %v1413_v0 = vld [vmem:[%s3044_s10 + $0x2e8] sm:$0xff]  ;;  %v1379_v21 = vld [vmem:[%s3044_s10 + $0x1d8] sm:$0xff] }
  0xca   : > { %1814 = vmatprep.subr.mxu0 %v1541_v7  ;;  %1728 = vmatprep.subr.mxu1 %v1413_v0  ;;  %v324_v7 = vld [vmem:[%s4680_s0 + $0x2d0] sm:$0xff]  ;;  %v326_v19 = vld [vmem:[%s4680_s0 + $0x2e0] sm:$0xff] }
  0xcb   : > { %653 = vxpose.xlu0.b32.cont [4/16] (narrow) %v301_v2, 56  ;;  %1687 = vmatprep.mubr.f32.mxu0 %v1249_v24  ;;  %v542_v32 = vpop.trf.xlu0  ;;  %v323_v2 = vld [vmem:[%s4680_s0 + $0x2c8] sm:$0xff] }
  0xcc   : > { %685 = vxpose.xlu1.b32.cont [4/16] (narrow) %v317_v3, 56  ;;  %v574_v29 = vpop.trf.xlu1  ;;  %v1266_v40 = vmul.f32 %v3300_v46, %v542_v32  ;;  %1688 = vmatmul.mubr.f32.gmra.mxu0 %v1248_v26  ;;  %v1433_v3 = vld [vmem:[%s3044_s10 + $0x388] sm:$0xff]  ;;  %v311_v24 = vld [vmem:[%s4680_s0 + $0x268] sm:$0xff]  ;;  %v1340_v26 = vld [vmem:[%s3044_s10 + $0xa0] sm:$0xff] }
  0xcd   : > { %1815 = vmatpush1.xpose.msra.mxu0 %v1540_v10  ;;  %v1267_v38 = vmul.f32 %v3292_v43, %v574_v29  ;;  %v1377_v10 = vld [vmem:[%s3044_s10 + $0x1c8] sm:$0xff]  ;;  %v1360_v29 = vld [vmem:[%s3044_s10 + $0x140] sm:$0xff] }
  0xce   : > { %1816 = vmatprep.subr.mxu0 %v1523_v17  ;;  %v1396_v17 = vld [vmem:[%s3044_s10 + $0x260] sm:$0xff] }
  0xcf   : > { %654 = vxpose.xlu0.b32.cont [5/16] (narrow) %v302_v12, 56  ;;  %1692 = vmatprep.mubr.f32.mxu0 %v1267_v38  ;;  %v543_v47 = vpop.trf.xlu0  ;;  %v309_v12 = vld [vmem:[%s4680_s0 + $0x258] sm:$0xff]  ;;  %v328_v32 = vld [vmem:[%s4680_s0 + $0x2f0] sm:$0xff]  ;;  %v1322_v38 = vld [vmem:[%s3044_s10 + $0x10] sm:$0xff] }
  0xd0   : > { %686 = vxpose.xlu1.b32.cont [5/16] (narrow) %v318_v13, 56  ;;  %v575_v44 = vpop.trf.xlu1  ;;  %v1284_v52 = vmul.f32 %v3300_v46, %v543_v47  ;;  %1693 = vmatmul.mubr.f32.gmra.mxu0 %v1266_v40  ;;  %v325_v13 = vld [vmem:[%s4680_s0 + $0x2d8] sm:$0xff] }
  0xd1   : > { %1817 = vmatpush1.xpose.msra.mxu0 %v1522_v20  ;;  %v1285_v50 = vmul.f32 %v3292_v43, %v575_v44  ;;  %v1358_v20 = vld [vmem:[%s3044_s10 + $0x130] sm:$0xff]  ;;  %v1597_v40 = vld [vmem:[%s3044_s10 + $0x8a8] sm:$0xff] }
  0xd2   : > { %1818 = vmatprep.subr.mxu0 %v1505_v27  ;;  %v1361_v27 = vld [vmem:[%s3044_s10 + $0x148] sm:$0xff] }
  0xd3   : > { %655 = vxpose.xlu0.b32.cont [6/16] (narrow) %v303_v22, 56  ;;  %1697 = vmatprep.mubr.f32.mxu0 %v1285_v50  ;;  %v544_v61 = vpop.trf.xlu0  ;;  %v1341_v22 = vld [vmem:[%s3044_s10 + $0xa8] sm:$0xff] }
  0xd4   : > { %687 = vxpose.xlu1.b32.cont [6/16] (narrow) %v319_v23, 56  ;;  %v576_v55 = vpop.trf.xlu1  ;;  %v1302_v62 = vmul.f32 %v3300_v46, %v544_v61  ;;  %1698 = vmatmul.mubr.f32.gmra.mxu0 %v1284_v52  ;;  %v1412_v46 = vld [vmem:[%s3044_s10 + $0x2e0] sm:$0xff]  ;;  %v1378_v23 = vld [vmem:[%s3044_s10 + $0x1d0] sm:$0xff] }
  0xd5   : > { %1819 = vmatpush1.xpose.msra.mxu0 %v1504_v30  ;;  %v1303_v59 = vmul.f32 %v3292_v43, %v576_v55  ;;  %v307_v43 = vld [vmem:[%s4680_s0 + $0x248] sm:$0xff]  ;;  %1729 = vmatpush1.xpose.msra.mxu1 %v1412_v46  ;;  %v312_v30 = vld [vmem:[%s4680_s0 + $0x270] sm:$0xff]  ;;  %v329_v44 = vld [vmem:[%s4680_s0 + $0x2f8] sm:$0xff] }
  0xd6   : > { %1820 = vmatprep.subr.mxu0 %v1487_v41  ;;  %1730 = vmatprep.subr.mxu1 %v1395_v4  ;;  %v1342_v41 = vld [vmem:[%s3044_s10 + $0xb0] sm:$0xff]  ;;  %v1561_v46 = vld [vmem:[%s3044_s10 + $0x788] sm:$0xff]  ;;  %v332_v4 = vld [vmem:[%s4680_s0 + $0x310] sm:$0xff] }
  0xd7   : > { %656 = vxpose.xlu0.b32.cont [7/16] (narrow) %v304_v33, 56  ;;  %1702 = vmatprep.mubr.f32.mxu0 %v1303_v59  ;;  %v1114_v33 = vsub.s32 2, %v3270_v31  ;;  %v346_v52 = vld [vmem:[%s4680_s0 + $0x380] sm:$0xff]  ;;  %v347_v61 = vld [vmem:[%s4680_s0 + $0x388] sm:$0xff] }
  0xd8   : > { %688 = vxpose.xlu1.b32.cont [7/16] (narrow) %v320_v34, 56  ;;  %1703 = vmatmul.mubr.f32.gmra.mxu0 %v1302_v62  ;;  %v1118_v34 = vsub.s32 3, %v3270_v31  ;;  %v331_v62 = vld [vmem:[%s4680_s0 + $0x308] sm:$0xff] }
  0xd9   : > { %1821 = vmatpush1.xpose.msra.mxu0 %v1486_v45  ;;  %1731 = vmatpush1.xpose.msra.mxu1 %v1394_v8  ;;  %v3470_v45 = vrot.slane %v3280_v36, %v1114_v33 }
  0xda   : > { %1822 = vmatprep.subr.mxu0 %v1469_v53  ;;  %1732 = vmatprep.subr.mxu1 %v1377_v10  ;;  %v3475_v47 = vrot.slane %v3280_v36, %v1118_v34  ;;  %v330_v53 = vld [vmem:[%s4680_s0 + $0x300] sm:$0xff]  ;;  %v1543_v10 = vld [vmem:[%s3044_s10 + $0x6f8] sm:$0xff] }
  0xdb   : > { %657 = vxpose.xlu0.b32.cont [8/16] (narrow) %v305_v48, 56  ;;  %v1325_v48 = vld [vmem:[%s3044_s10 + $0x28] sm:$0xff] }
  0xdc   : > { %689 = vxpose.xlu1.b32.cont [8/16] (narrow) %v321_v49, 56 }
  0xdd   : > { %1823 = vmatpush1.xpose.msra.mxu0 %v1468_v56  ;;  %1733 = vmatpush1.xpose.msra.mxu1 %v1376_v14  ;;  %v1596_v56 = vld [vmem:[%s3044_s10 + $0x8a0] sm:$0xff] }
  0xde   : > { %1824 = vmatprep.subr.mxu0 %v1451_v63  ;;  %1734 = vmatprep.subr.mxu1 %v1359_v16 }
  0xdf   : > { %658 = vxpose.xlu0.b32.cont [9/16] (narrow) %v306_v57, 56  ;;  %v1599_v57 = vld [vmem:[%s3044_s10 + $0x8b8] sm:$0xff] }
  0xe0   : > { %690 = vxpose.xlu1.b32.cont [9/16] (narrow) %v322_v58, 56 }
  0xe1   : > { %1825 = vmatpush1.xpose.msra.mxu0 %v1450_v1  ;;  %1735 = vmatpush1.xpose.msra.mxu1 %v1358_v20  ;;  %v1578_v1 = vld [vmem:[%s3044_s10 + $0x810] sm:$0xff] }
  0xe2   : > { %1826 = vmatprep.subr.mxu0 %v1433_v3  ;;  %1736 = vmatprep.subr.mxu1 %v1341_v22  ;;  %v348_v3 = vld [vmem:[%s4680_s0 + $0x390] sm:$0xff]  ;;  %v334_v20 = vld [vmem:[%s4680_s0 + $0x320] sm:$0xff] }
  0xe3   : > { %659 = vxpose.xlu0.b32.cont [10/16] (narrow) %v307_v43, 56 }
  0xe4   : > { %691 = vxpose.xlu1.b32.cont [10/16] (narrow) %v323_v2, 56 }
  0xe5   : > { %1827 = vmatpush1.xpose.msra.mxu0 %v1432_v5  ;;  %1737 = vmatpush1.xpose.msra.mxu1 %v1340_v26  ;;  %v1507_v26 = vld [vmem:[%s3044_s10 + $0x5d8] sm:$0xff] }
  0xe6   : > { %1828 = vmatprep.subr.mxu0 %v1415_v9  ;;  %1738 = vmatprep.subr.mxu1 %v1323_v28  ;;  %v335_v28 = vld [vmem:[%s4680_s0 + $0x328] sm:$0xff] }
  0xe7   : > { %660 = vxpose.xlu0.b32.cont [11/16] (narrow) %v308_v6, 56 }
  0xe8   : > { %692 = vxpose.xlu1.b32.cont [11/16] (narrow) %v324_v7, 56  ;;  %v1560_v7 = vld [vmem:[%s3044_s10 + $0x780] sm:$0xff] }
  0xe9   : > { %1829 = vmatpush1.xpose.msra.mxu0 %v1414_v11  ;;  %1739 = vmatpush1.xpose.msra.mxu1 %v1322_v38  ;;  %v349_v11 = vld [vmem:[%s4680_s0 + $0x398] sm:$0xff] }
  0xea   : > { %1830 = vmatprep.subr.mxu0 %v1397_v15  ;;  %1908 = vmatprep.subr.mxu1 %v1597_v40  ;;  %v1542_v15 = vld [vmem:[%s3044_s10 + $0x6f0] sm:$0xff]  ;;  %v1489_v40 = vld [vmem:[%s3044_s10 + $0x548] sm:$0xff] }
  0xeb   : > { %661 = vxpose.xlu0.b32.cont [12/16] (narrow) %v309_v12, 56  ;;  %v333_v12 = vld [vmem:[%s4680_s0 + $0x318] sm:$0xff] }
  0xec   : > { %693 = vxpose.xlu1.b32.cont [12/16] (narrow) %v325_v13, 56 }
  0xed   : > { %1831 = vmatpush1.xpose.msra.mxu0 %v1396_v17 }
  0xee   : > { %1832 = vmatprep.subr.mxu0 %v1379_v21 }
  0xef   : > { %662 = vxpose.xlu0.b32.cont [13/16] (narrow) %v310_v18, 56  ;;  %v1525_v18 = vld [vmem:[%s3044_s10 + $0x668] sm:$0xff] }
  0xf0   : > { %694 = vxpose.xlu1.b32.cont [13/16] (narrow) %v326_v19, 56  ;;  %v350_v19 = vld [vmem:[%s4680_s0 + $0x3a0] sm:$0xff] }
  0xf1   : > { %1833 = vmatpush1.xpose.msra.mxu0 %v1378_v23  ;;  %v1524_v23 = vld [vmem:[%s3044_s10 + $0x660] sm:$0xff] }
  0xf2   : > { %1834 = vmatprep.subr.mxu0 %v1361_v27  ;;  %v351_v27 = vld [vmem:[%s4680_s0 + $0x3a8] sm:$0xff] }
  0xf3   : > { %663 = vxpose.xlu0.b32.cont [14/16] (narrow) %v311_v24, 56 }
  0xf4   : > { %695 = vxpose.xlu1.b32.cont [14/16] (narrow) %v327_v25, 56 }
  0xf5   : > { %1835 = vmatpush1.xpose.msra.mxu0 %v1360_v29 }
  0xf6   : > { %1836 = vmatprep.subr.mxu0 %v1343_v39 }
  0xf7   : > { %664 = vxpose.xlu0.b32.cont [15/16] (narrow) %v312_v30, 56 }
  0xf8   : > { %696 = vxpose.xlu1.b32.cont [15/16] (narrow) %v328_v32, 56  ;;  %v1506_v32 = vld [vmem:[%s3044_s10 + $0x5d0] sm:$0xff] }
  0xf9   : > { %1837 = vmatpush1.xpose.msra.mxu0 %v1342_v41  ;;  %v352_v41 = vld [vmem:[%s4680_s0 + $0x3b0] sm:$0xff] }
  0xfa   : > { %1838 = vmatprep.subr.mxu0 %v1325_v48 }
  0xfb   : > { %665 = vxpose.xlu0.b32.end [16/16] (narrow) %v313_v42, 56  ;;  %v602_v50 = vpop.trf.xlu0  ;;  %v336_v42 = vld [vmem:[%s4680_s0 + $0x330] sm:$0xff] }
  0xfc   : > { %697 = vxpose.xlu1.b32.end [16/16] (narrow) %v329_v44, 56  ;;  %v634_v49 = vpop.trf.xlu1  ;;  %v1196_v54 = vmul.f32 %v3470_v45, %v602_v50  ;;  %v1471_v50 = vld [vmem:[%s3044_s10 + $0x4b8] sm:$0xff] }
  0xfd   : > { %v1197_v55 = vmul.f32 %v3475_v47, %v634_v49  ;;  %1839 = vmatpush1.xpose.msra.mxu0 %v1324_v51  ;;  %v1488_v49 = vld [vmem:[%s3044_s10 + $0x540] sm:$0xff] }
  0xfe   : > { %2008 = vmatprep.subr.mxu0 %v1599_v57  ;;  %v353_v51 = vld [vmem:[%s4680_s0 + $0x3b8] sm:$0xff]  ;;  %v355_v57 = vld [vmem:[%s4680_s0 + $0x3c8] sm:$0xff] }
  0xff   : > { %1772 = vmatprep.mubr.f32.mxu1 %v1197_v55  ;;  %746 = vxpose.xlu0.b32.start [1/16] (narrow) %v346_v52, 56  ;;  %v603_v59 = vpop.trf.xlu0  ;;  %v1453_v52 = vld [vmem:[%s3044_s10 + $0x428] sm:$0xff]  ;;  %v1452_v55 = vld [vmem:[%s3044_s10 + $0x420] sm:$0xff] }
 0x100   : > { %714 = vxpose.xlu1.b32.start [1/16] (narrow) %v330_v53, 56  ;;  %v635_v58 = vpop.trf.xlu1  ;;  %v1214_v0 = vmul.f32 %v3470_v45, %v603_v59  ;;  %1773 = vmatmul.mubr.f32.vlgmr.msra.gmra.mxu1 %v1196_v54  ;;  %v354_v53 = vld [vmem:[%s4680_s0 + $0x3c0] sm:$0xff] }
 0x101   : > { %v1215_v63 = vmul.f32 %v3475_v47, %v635_v58  ;;  %1909 = vmatpush1.xpose.msra.mxu1 %v1596_v56  ;;  %v338_v54 = vld [vmem:[%s4680_s0 + $0x340] sm:$0xff]  ;;  %v1435_v56 = vld [vmem:[%s3044_s10 + $0x398] sm:$0xff] }
 0x102   : > { %1910 = vmatprep.subr.mxu1 %v1579_v60  ;;  %v339_v58 = vld [vmem:[%s4680_s0 + $0x348] sm:$0xff]  ;;  %v1417_v60 = vld [vmem:[%s3044_s10 + $0x308] sm:$0xff] }
 0x103   : > { %1777 = vmatprep.mubr.f32.mxu1 %v1215_v63  ;;  %747 = vxpose.xlu0.b32.cont [2/16] (narrow) %v347_v61, 56  ;;  %v604_v2 = vpop.trf.xlu0  ;;  %v1434_v59 = vld [vmem:[%s3044_s10 + $0x390] sm:$0xff]  ;;  %v356_v61 = vld [vmem:[%s4680_s0 + $0x3d0] sm:$0xff] }
 0x104   : > { %715 = vxpose.xlu1.b32.cont [2/16] (narrow) %v331_v62, 56  ;;  %v636_v43 = vpop.trf.xlu1  ;;  %v1232_v6 = vmul.f32 %v3470_v45, %v604_v2  ;;  %1778 = vmatmul.mubr.f32.gmra.mxu1 %v1214_v0  ;;  %v340_v62 = vld [vmem:[%s4680_s0 + $0x350] sm:$0xff]  ;;  %v1398_v2 = vld [vmem:[%s3044_s10 + $0x270] sm:$0xff] }
 0x105   : > { %v1233_v5 = vmul.f32 %v3475_v47, %v636_v43  ;;  %1911 = vmatpush1.xpose.msra.mxu1 %v1578_v1  ;;  %v1416_v63 = vld [vmem:[%s3044_s10 + $0x300] sm:$0xff]  ;;  %v1399_v0 = vld [vmem:[%s3044_s10 + $0x278] sm:$0xff] }
 0x106   : > { %1912 = vmatprep.subr.mxu1 %v1561_v46  ;;  %v357_v1 = vld [vmem:[%s4680_s0 + $0x3d8] sm:$0xff] }
 0x107   : > { %1782 = vmatprep.mubr.f32.mxu1 %v1233_v5  ;;  %748 = vxpose.xlu0.b32.cont [3/16] (narrow) %v348_v3, 56  ;;  %v605_v9 = vpop.trf.xlu0  ;;  %v341_v43 = vld [vmem:[%s4680_s0 + $0x358] sm:$0xff]  ;;  %v358_v3 = vld [vmem:[%s4680_s0 + $0x3e0] sm:$0xff] }
 0x108   : > { %716 = vxpose.xlu1.b32.cont [3/16] (narrow) %v332_v4, 56  ;;  %v637_v8 = vpop.trf.xlu1  ;;  %v1250_v14 = vmul.f32 %v3470_v45, %v605_v9  ;;  %1783 = vmatmul.mubr.f32.gmra.mxu1 %v1232_v6  ;;  %v1381_v46 = vld [vmem:[%s3044_s10 + $0x1e8] sm:$0xff]  ;;  %v1380_v5 = vld [vmem:[%s3044_s10 + $0x1e0] sm:$0xff]  ;;  %v1363_v6 = vld [vmem:[%s3044_s10 + $0x158] sm:$0xff] }
 0x109   : > { %v1251_v13 = vmul.f32 %v3475_v47, %v637_v8  ;;  %1913 = vmatpush1.xpose.msra.mxu1 %v1560_v7  ;;  %v342_v4 = vld [vmem:[%s4680_s0 + $0x360] sm:$0xff]  ;;  %v359_v7 = vld [vmem:[%s4680_s0 + $0x3e8] sm:$0xff] }
 0x10a   : > { %1914 = vmatprep.subr.mxu1 %v1543_v10  ;;  %v343_v8 = vld [vmem:[%s4680_s0 + $0x368] sm:$0xff]  ;;  %v1345_v10 = vld [vmem:[%s3044_s10 + $0xc8] sm:$0xff] }
 0x10b   : > { %1787 = vmatprep.mubr.f32.mxu1 %v1251_v13  ;;  %749 = vxpose.xlu0.b32.cont [4/16] (narrow) %v349_v11, 56  ;;  %v606_v17 = vpop.trf.xlu0  ;;  %v1362_v9 = vld [vmem:[%s3044_s10 + $0x150] sm:$0xff]  ;;  %v360_v11 = vld [vmem:[%s4680_s0 + $0x3f0] sm:$0xff]  ;;  %v1126_v13 = vsub.s32 5, %v3270_v31 }
 0x10c   : > { %717 = vxpose.xlu1.b32.cont [4/16] (narrow) %v333_v12, 56  ;;  %v638_v16 = vpop.trf.xlu1  ;;  %v1268_v22 = vmul.f32 %v3470_v45, %v606_v17  ;;  %1788 = vmatmul.mubr.f32.gmra.mxu1 %v1250_v14  ;;  %v344_v12 = vld [vmem:[%s4680_s0 + $0x370] sm:$0xff]  ;;  %v1122_v14 = vsub.s32 4, %v3270_v31  ;;  %v361_v17 = vld [vmem:[%s4680_s0 + $0x3f8] sm:$0xff] }
 0x10d   : > { %v1269_v21 = vmul.f32 %v3475_v47, %v638_v16  ;;  %1915 = vmatpush1.xpose.msra.mxu1 %v1542_v15  ;;  %v1344_v15 = vld [vmem:[%s3044_s10 + $0xc0] sm:$0xff]  ;;  %v1327_v16 = vld [vmem:[%s3044_s10 + $0x38] sm:$0xff] }
 0x10e   : > { %1916 = vmatprep.subr.mxu1 %v1525_v18  ;;  %v345_v18 = vld [vmem:[%s4680_s0 + $0x378] sm:$0xff] }
 0x10f   : > { %1792 = vmatprep.mubr.f32.mxu1 %v1269_v21  ;;  %750 = vxpose.xlu0.b32.cont [5/16] (narrow) %v350_v19, 56  ;;  %v607_v25 = vpop.trf.xlu0  ;;  %v3625_v19 = vrot.slane %v3280_v36, %v1126_v13  ;;  %v1326_v21 = vld [vmem:[%s3044_s10 + $0x30] sm:$0xff] }
 0x110   : > { %718 = vxpose.xlu1.b32.cont [5/16] (narrow) %v334_v20, 56  ;;  %v639_v24 = vpop.trf.xlu1  ;;  %v1286_v30 = vmul.f32 %v3470_v45, %v607_v25  ;;  %1793 = vmatmul.mubr.f32.gmra.mxu1 %v1268_v22  ;;  %v3630_v20 = vrot.slane %v3280_v36, %v1122_v14  ;;  %v362_v25 = vld [vmem:[%s4680_s0 + $0x400] sm:$0xff] }
 0x111   : > { %v1287_v29 = vmul.f32 %v3475_v47, %v639_v24  ;;  %1917 = vmatpush1.xpose.msra.mxu1 %v1524_v23  ;;  %v378_v24 = vld [vmem:[%s4680_s0 + $0x480] sm:$0xff] }
 0x112   : > { %1918 = vmatprep.subr.mxu1 %v1507_v26 }
 0x113   : > { %1797 = vmatprep.mubr.f32.mxu1 %v1287_v29  ;;  %751 = vxpose.xlu0.b32.cont [6/16] (narrow) %v351_v27, 56  ;;  %v608_v39 = vpop.trf.xlu0  ;;  %v1598_v27 = vld [vmem:[%s3044_s10 + $0x8b0] sm:$0xff]  ;;  %v1581_v29 = vld [vmem:[%s3044_s10 + $0x828] sm:$0xff] }
 0x114   : > { %719 = vxpose.xlu1.b32.cont [6/16] (narrow) %v335_v28, 56  ;;  %v640_v38 = vpop.trf.xlu1  ;;  %v1304_v48 = vmul.f32 %v3470_v45, %v608_v39  ;;  %1798 = vmatmul.mubr.f32.gmra.mxu1 %v1286_v30  ;;  %v1470_v45 = vld [vmem:[%s3044_s10 + $0x4b0] sm:$0xff]  ;;  %v1601_v28 = vld [vmem:[%s3044_s10 + $0x8c8] sm:$0xff] }
 0x115   : > { %v1305_v44 = vmul.f32 %v3475_v47, %v640_v38  ;;  %1919 = vmatpush1.xpose.msra.mxu1 %v1506_v32  ;;  %v337_v47 = vld [vmem:[%s4680_s0 + $0x338] sm:$0xff]  ;;  %v379_v38 = vld [vmem:[%s4680_s0 + $0x488] sm:$0xff] }
 0x116   : > { %1920 = vmatprep.subr.mxu1 %v1489_v40  ;;  %v363_v39 = vld [vmem:[%s4680_s0 + $0x408] sm:$0xff] }
 0x117   : > { %1802 = vmatprep.mubr.f32.mxu1 %v1305_v44  ;;  %752 = vxpose.xlu0.b32.cont [7/16] (narrow) %v352_v41, 56  ;;  %v1563_v44 = vld [vmem:[%s3044_s10 + $0x798] sm:$0xff] }
 0x118   : > { %720 = vxpose.xlu1.b32.cont [7/16] (narrow) %v336_v42, 56  ;;  %1803 = vmatmul.mubr.f32.gmra.mxu1 %v1304_v48  ;;  %v1580_v42 = vld [vmem:[%s3044_s10 + $0x820] sm:$0xff] }
 0x119   : > { %1921 = vmatpush1.xpose.msra.mxu1 %v1488_v49 }
 0x11a   : > { %1922 = vmatprep.subr.mxu1 %v1471_v50  ;;  %v380_v50 = vld [vmem:[%s4680_s0 + $0x490] sm:$0xff] }
 0x11b   : > { %753 = vxpose.xlu0.b32.cont [8/16] (narrow) %v353_v51, 56  ;;  %v364_v51 = vld [vmem:[%s4680_s0 + $0x410] sm:$0xff] }
 0x11c   : > { %721 = vxpose.xlu1.b32.cont [8/16] (narrow) %v337_v47, 56 }
 0x11d   : > { %1923 = vmatpush1.xpose.msra.mxu1 %v1470_v45 }
 0x11e   : > { %1924 = vmatprep.subr.mxu1 %v1453_v52  ;;  %v1562_v52 = vld [vmem:[%s3044_s10 + $0x790] sm:$0xff] }
 0x11f   : > { %754 = vxpose.xlu0.b32.cont [9/16] (narrow) %v354_v53, 56  ;;  %v1545_v53 = vld [vmem:[%s3044_s10 + $0x708] sm:$0xff] }
 0x120   : > { %722 = vxpose.xlu1.b32.cont [9/16] (narrow) %v338_v54, 56 }
 0x121   : > { %1925 = vmatpush1.xpose.msra.mxu1 %v1452_v55 }
 0x122   : > { %1926 = vmatprep.subr.mxu1 %v1435_v56  ;;  %v381_v56 = vld [vmem:[%s4680_s0 + $0x498] sm:$0xff] }
 0x123   : > { %755 = vxpose.xlu0.b32.cont [10/16] (narrow) %v355_v57, 56  ;;  %v365_v57 = vld [vmem:[%s4680_s0 + $0x418] sm:$0xff] }
 0x124   : > { %723 = vxpose.xlu1.b32.cont [10/16] (narrow) %v339_v58, 56 }
 0x125   : > { %1927 = vmatpush1.xpose.msra.mxu1 %v1434_v59 }
 0x126   : > { %1928 = vmatprep.subr.mxu1 %v1417_v60  ;;  %v1544_v60 = vld [vmem:[%s3044_s10 + $0x700] sm:$0xff] }
 0x127   : > { %756 = vxpose.xlu0.b32.cont [11/16] (narrow) %v356_v61, 56  ;;  %v1527_v61 = vld [vmem:[%s3044_s10 + $0x678] sm:$0xff] }
 0x128   : > { %724 = vxpose.xlu1.b32.cont [11/16] (narrow) %v340_v62, 56 }
 0x129   : > { %1929 = vmatpush1.xpose.msra.mxu1 %v1416_v63 }
 0x12a   : > { %1930 = vmatprep.subr.mxu1 %v1399_v0  ;;  %v382_v0 = vld [vmem:[%s4680_s0 + $0x4a0] sm:$0xff] }
 0x12b   : > { %757 = vxpose.xlu0.b32.cont [12/16] (narrow) %v357_v1, 56  ;;  %v366_v1 = vld [vmem:[%s4680_s0 + $0x420] sm:$0xff] }
 0x12c   : > { %725 = vxpose.xlu1.b32.cont [12/16] (narrow) %v341_v43, 56 }
 0x12d   : > { %1931 = vmatpush1.xpose.msra.mxu1 %v1398_v2 }
 0x12e   : > { %1932 = vmatprep.subr.mxu1 %v1381_v46  ;;  %v1526_v46 = vld [vmem:[%s3044_s10 + $0x670] sm:$0xff] }
 0x12f   : > { %758 = vxpose.xlu0.b32.cont [13/16] (narrow) %v358_v3, 56  ;;  %v1509_v3 = vld [vmem:[%s3044_s10 + $0x5e8] sm:$0xff] }
 0x130   : > { %726 = vxpose.xlu1.b32.cont [13/16] (narrow) %v342_v4, 56 }
 0x131   : > { %1933 = vmatpush1.xpose.msra.mxu1 %v1380_v5 }
 0x132   : > { %1934 = vmatprep.subr.mxu1 %v1363_v6  ;;  %v383_v6 = vld [vmem:[%s4680_s0 + $0x4a8] sm:$0xff] }
 0x133   : > { %759 = vxpose.xlu0.b32.cont [14/16] (narrow) %v359_v7, 56  ;;  %v367_v7 = vld [vmem:[%s4680_s0 + $0x428] sm:$0xff] }
 0x134   : > { %727 = vxpose.xlu1.b32.cont [14/16] (narrow) %v343_v8, 56 }
 0x135   : > { %1935 = vmatpush1.xpose.msra.mxu1 %v1362_v9 }
 0x136   : > { %1936 = vmatprep.subr.mxu1 %v1345_v10  ;;  %v1508_v10 = vld [vmem:[%s3044_s10 + $0x5e0] sm:$0xff] }
 0x137   : > { %760 = vxpose.xlu0.b32.cont [15/16] (narrow) %v360_v11, 56  ;;  %v1491_v11 = vld [vmem:[%s3044_s10 + $0x558] sm:$0xff] }
 0x138   : > { %728 = vxpose.xlu1.b32.cont [15/16] (narrow) %v344_v12, 56 }
 0x139   : > { %1937 = vmatpush1.xpose.msra.mxu1 %v1344_v15 }
 0x13a   : > { %1938 = vmatprep.subr.mxu1 %v1327_v16  ;;  %v384_v16 = vld [vmem:[%s4680_s0 + $0x4b0] sm:$0xff] }
 0x13b   : > { %761 = vxpose.xlu0.b32.end [16/16] (narrow) %v361_v17, 56  ;;  %v666_v23 = vpop.trf.xlu0  ;;  %v368_v17 = vld [vmem:[%s4680_s0 + $0x430] sm:$0xff] }
 0x13c   : > { %729 = vxpose.xlu1.b32.end [16/16] (narrow) %v345_v18, 56  ;;  %v698_v22 = vpop.trf.xlu1  ;;  %v1198_v36 = vmul.f32 %v3630_v20, %v666_v23  ;;  %v1473_v23 = vld [vmem:[%s3044_s10 + $0x4c8] sm:$0xff] }
 0x13d   : > { %v1199_v26 = vmul.f32 %v3625_v19, %v698_v22  ;;  %1939 = vmatpush1.xpose.msra.mxu1 %v1326_v21  ;;  %v1490_v22 = vld [vmem:[%s3044_s10 + $0x550] sm:$0xff] }
 0x13e   : > { %2108 = vmatprep.subr.mxu1 %v1601_v28  ;;  %v1437_v28 = vld [vmem:[%s3044_s10 + $0x3a8] sm:$0xff] }
 0x13f   : > { %1872 = vmatprep.mubr.f32.mxu0 %v1199_v26  ;;  %810 = vxpose.xlu0.b32.start [1/16] (narrow) %v378_v24, 56  ;;  %v667_v30 = vpop.trf.xlu0  ;;  %v385_v24 = vld [vmem:[%s4680_s0 + $0x4b8] sm:$0xff]  ;;  %v386_v26 = vld [vmem:[%s4680_s0 + $0x4c0] sm:$0xff] }
 0x140   : > { %778 = vxpose.xlu1.b32.start [1/16] (narrow) %v362_v25, 56  ;;  %v699_v32 = vpop.trf.xlu1  ;;  %1873 = vmatmul.mubr.f32.vlgmr.msra.gmra.mxu0 %v1198_v36  ;;  %v1216_v40 = vmul.f32 %v3630_v20, %v667_v30  ;;  %v1455_v25 = vld [vmem:[%s3044_s10 + $0x438] sm:$0xff]  ;;  %v370_v36 = vld [vmem:[%s4680_s0 + $0x440] sm:$0xff] }
 0x141   : > { %v1217_v41 = vmul.f32 %v3625_v19, %v699_v32  ;;  %2009 = vmatpush1.xpose.msra.mxu0 %v1598_v27  ;;  %v1454_v27 = vld [vmem:[%s3044_s10 + $0x430] sm:$0xff]  ;;  %v1436_v32 = vld [vmem:[%s3044_s10 + $0x3a0] sm:$0xff] }
 0x142   : > { %2010 = vmatprep.subr.mxu0 %v1581_v29  ;;  %v387_v29 = vld [vmem:[%s4680_s0 + $0x4c8] sm:$0xff] }
 0x143   : > { %1877 = vmatprep.mubr.f32.mxu0 %v1217_v41  ;;  %811 = vxpose.xlu0.b32.cont [2/16] (narrow) %v379_v38, 56  ;;  %v668_v48 = vpop.trf.xlu0  ;;  %v371_v30 = vld [vmem:[%s4680_s0 + $0x448] sm:$0xff] }
 0x144   : > { %779 = vxpose.xlu1.b32.cont [2/16] (narrow) %v363_v39, 56  ;;  %v700_v49 = vpop.trf.xlu1  ;;  %v1234_v47 = vmul.f32 %v3630_v20, %v668_v48  ;;  %1878 = vmatmul.mubr.f32.gmra.mxu0 %v1216_v40  ;;  %v1419_v38 = vld [vmem:[%s3044_s10 + $0x318] sm:$0xff]  ;;  %v1418_v41 = vld [vmem:[%s3044_s10 + $0x310] sm:$0xff]  ;;  %v373_v48 = vld [vmem:[%s4680_s0 + $0x458] sm:$0xff] }
 0x145   : > { %v1235_v45 = vmul.f32 %v3625_v19, %v700_v49  ;;  %2011 = vmatpush1.xpose.msra.mxu0 %v1580_v42  ;;  %v388_v39 = vld [vmem:[%s4680_s0 + $0x4d0] sm:$0xff]  ;;  %v1401_v42 = vld [vmem:[%s3044_s10 + $0x288] sm:$0xff] }
 0x146   : > { %2012 = vmatprep.subr.mxu0 %v1563_v44  ;;  %v372_v40 = vld [vmem:[%s4680_s0 + $0x450] sm:$0xff]  ;;  %v389_v44 = vld [vmem:[%s4680_s0 + $0x4d8] sm:$0xff] }
 0x147   : > { %1882 = vmatprep.mubr.f32.mxu0 %v1235_v45  ;;  %812 = vxpose.xlu0.b32.cont [3/16] (narrow) %v380_v50, 56  ;;  %v669_v54 = vpop.trf.xlu0  ;;  %v1400_v49 = vld [vmem:[%s3044_s10 + $0x280] sm:$0xff]  ;;  %v1383_v50 = vld [vmem:[%s3044_s10 + $0x1f8] sm:$0xff]  ;;  %v1382_v45 = vld [vmem:[%s3044_s10 + $0x1f0] sm:$0xff] }
 0x148   : > { %780 = vxpose.xlu1.b32.cont [3/16] (narrow) %v364_v51, 56  ;;  %v701_v55 = vpop.trf.xlu1  ;;  %v1252_v58 = vmul.f32 %v3630_v20, %v669_v54  ;;  %1883 = vmatmul.mubr.f32.gmra.mxu0 %v1234_v47  ;;  %v390_v51 = vld [vmem:[%s4680_s0 + $0x4e0] sm:$0xff]  ;;  %v375_v54 = vld [vmem:[%s4680_s0 + $0x468] sm:$0xff] }
 0x149   : > { %v1253_v59 = vmul.f32 %v3625_v19, %v701_v55  ;;  %2013 = vmatpush1.xpose.msra.mxu0 %v1562_v52  ;;  %v374_v47 = vld [vmem:[%s4680_s0 + $0x460] sm:$0xff]  ;;  %v1364_v55 = vld [vmem:[%s3044_s10 + $0x160] sm:$0xff] }
 0x14a   : > { %2014 = vmatprep.subr.mxu0 %v1545_v53  ;;  %v1365_v52 = vld [vmem:[%s3044_s10 + $0x168] sm:$0xff]  ;;  %v391_v53 = vld [vmem:[%s4680_s0 + $0x4e8] sm:$0xff] }
 0x14b   : > { %1887 = vmatprep.mubr.f32.mxu0 %v1253_v59  ;;  %813 = vxpose.xlu0.b32.cont [4/16] (narrow) %v381_v56, 56  ;;  %v670_v62 = vpop.trf.xlu0  ;;  %v1347_v56 = vld [vmem:[%s3044_s10 + $0xd8] sm:$0xff]  ;;  %v1134_v59 = vsub.s32 7, %v3270_v31 }
 0x14c   : > { %781 = vxpose.xlu1.b32.cont [4/16] (narrow) %v365_v57, 56  ;;  %v702_v63 = vpop.trf.xlu1  ;;  %v1270_v43 = vmul.f32 %v3630_v20, %v670_v62  ;;  %1888 = vmatmul.mubr.f32.gmra.mxu0 %v1252_v58  ;;  %v392_v57 = vld [vmem:[%s4680_s0 + $0x4f0] sm:$0xff]  ;;  %v1329_v62 = vld [vmem:[%s3044_s10 + $0x48] sm:$0xff] }
 0x14d   : > { %v1271_v2 = vmul.f32 %v3625_v19, %v702_v63  ;;  %2015 = vmatpush1.xpose.msra.mxu0 %v1544_v60  ;;  %v376_v58 = vld [vmem:[%s4680_s0 + $0x470] sm:$0xff]  ;;  %v1130_v60 = vsub.s32 6, %v3270_v31  ;;  %v393_v63 = vld [vmem:[%s4680_s0 + $0x4f8] sm:$0xff] }
 0x14e   : > { %2016 = vmatprep.subr.mxu0 %v1527_v61  ;;  %v1346_v61 = vld [vmem:[%s3044_s10 + $0xd0] sm:$0xff] }
 0x14f   : > { %1892 = vmatprep.mubr.f32.mxu0 %v1271_v2  ;;  %814 = vxpose.xlu0.b32.cont [5/16] (narrow) %v382_v0, 56  ;;  %v671_v4 = vpop.trf.xlu0  ;;  %v377_v0 = vld [vmem:[%s4680_s0 + $0x478] sm:$0xff] }
 0x150   : > { %782 = vxpose.xlu1.b32.cont [5/16] (narrow) %v366_v1, 56  ;;  %v703_v5 = vpop.trf.xlu1  ;;  %v1288_v8 = vmul.f32 %v3630_v20, %v671_v4  ;;  %1893 = vmatmul.mubr.f32.gmra.mxu0 %v1270_v43  ;;  %v2800_v1 = vld [vmem:[#allocation2] sm:$0xff] }
 0x151   : > { %v1289_v9 = vmul.f32 %v3625_v19, %v703_v5  ;;  %2017 = vmatpush1.xpose.msra.mxu0 %v1526_v46  ;;  %v3778_v43 = vrot.slane %v2800_v1, %v1134_v59  ;;  %v3782_v2 = vrot.slane %v2800_v1, %v1130_v60  ;;  %v1328_v46 = vld [vmem:[%s3044_s10 + $0x40] sm:$0xff]  ;;  %v410_v5 = vld [vmem:[%s4680_s0 + $0x580] sm:$0xff] }
 0x152   : > { %2018 = vmatprep.subr.mxu0 %v1509_v3  ;;  %v416_v1 = vld [vmem:[%s4680_s0 + $0x5b0] sm:$0xff] }
 0x153   : > { %1897 = vmatprep.mubr.f32.mxu0 %v1289_v9  ;;  %815 = vxpose.xlu0.b32.cont [6/16] (narrow) %v383_v6, 56  ;;  %v672_v12 = vpop.trf.xlu0  ;;  %v394_v6 = vld [vmem:[%s4680_s0 + $0x500] sm:$0xff]  ;;  %v1600_v9 = vld [vmem:[%s3044_s10 + $0x8c0] sm:$0xff] }
 0x154   : > { %783 = vxpose.xlu1.b32.cont [6/16] (narrow) %v367_v7, 56  ;;  %v704_v15 = vpop.trf.xlu1  ;;  %v1306_v18 = vmul.f32 %v3630_v20, %v672_v12  ;;  %1898 = vmatmul.mubr.f32.gmra.mxu0 %v1288_v8  ;;  %v369_v20 = vld [vmem:[%s4680_s0 + $0x438] sm:$0xff] }
 0x155   : > { %v1307_v21 = vmul.f32 %v3625_v19, %v704_v15  ;;  %2019 = vmatpush1.xpose.msra.mxu0 %v1508_v10  ;;  %v1472_v19 = vld [vmem:[%s3044_s10 + $0x4c0] sm:$0xff]  ;;  %v1603_v10 = vld [vmem:[%s3044_s10 + $0x8d8] sm:$0xff] }
 0x156   : > { %2020 = vmatprep.subr.mxu0 %v1491_v11  ;;  %v1583_v15 = vld [vmem:[%s3044_s10 + $0x838] sm:$0xff] }
 0x157   : > { %1902 = vmatprep.mubr.f32.mxu0 %v1307_v21  ;;  %816 = vxpose.xlu0.b32.cont [7/16] (narrow) %v384_v16, 56  ;;  %v411_v16 = vld [vmem:[%s4680_s0 + $0x588] sm:$0xff] }
 0x158   : > { %784 = vxpose.xlu1.b32.cont [7/16] (narrow) %v368_v17, 56  ;;  %1903 = vmatmul.mubr.f32.gmra.mxu0 %v1306_v18  ;;  %v395_v17 = vld [vmem:[%s4680_s0 + $0x508] sm:$0xff] }
 0x159   : > { %2021 = vmatpush1.xpose.msra.mxu0 %v1490_v22  ;;  %v1582_v22 = vld [vmem:[%s3044_s10 + $0x830] sm:$0xff] }
 0x15a   : > { %2022 = vmatprep.subr.mxu0 %v1473_v23 }
 0x15b   : > { %817 = vxpose.xlu0.b32.cont [8/16] (narrow) %v385_v24, 56 }
 0x15c   : > { %785 = vxpose.xlu1.b32.cont [8/16] (narrow) %v369_v20, 56  ;;  %v1565_v20 = vld [vmem:[%s3044_s10 + $0x7a8] sm:$0xff] }
 0x15d   : > { %2023 = vmatpush1.xpose.msra.mxu0 %v1472_v19  ;;  %v412_v19 = vld [vmem:[%s4680_s0 + $0x590] sm:$0xff] }
 0x15e   : > { %2024 = vmatprep.subr.mxu0 %v1455_v25  ;;  %v396_v25 = vld [vmem:[%s4680_s0 + $0x510] sm:$0xff] }
 0x15f   : > { %818 = vxpose.xlu0.b32.cont [9/16] (narrow) %v386_v26, 56 }
 0x160   : > { %786 = vxpose.xlu1.b32.cont [9/16] (narrow) %v370_v36, 56 }
 0x161   : > { %2025 = vmatpush1.xpose.msra.mxu0 %v1454_v27  ;;  %v1564_v27 = vld [vmem:[%s3044_s10 + $0x7a0] sm:$0xff] }
 0x162   : > { %2026 = vmatprep.subr.mxu0 %v1437_v28 }
 0x163   : > { %819 = vxpose.xlu0.b32.cont [10/16] (narrow) %v387_v29, 56 }
 0x164   : > { %787 = vxpose.xlu1.b32.cont [10/16] (narrow) %v371_v30, 56  ;;  %v1547_v30 = vld [vmem:[%s3044_s10 + $0x718] sm:$0xff] }
 0x165   : > { %2027 = vmatpush1.xpose.msra.mxu0 %v1436_v32  ;;  %v413_v32 = vld [vmem:[%s4680_s0 + $0x598] sm:$0xff] }
 0x166   : > { %2028 = vmatprep.subr.mxu0 %v1419_v38  ;;  %v397_v38 = vld [vmem:[%s4680_s0 + $0x518] sm:$0xff] }
 0x167   : > { %820 = vxpose.xlu0.b32.cont [11/16] (narrow) %v388_v39, 56 }
 0x168   : > { %788 = vxpose.xlu1.b32.cont [11/16] (narrow) %v372_v40, 56 }
 0x169   : > { %2029 = vmatpush1.xpose.msra.mxu0 %v1418_v41  ;;  %v1546_v41 = vld [vmem:[%s3044_s10 + $0x710] sm:$0xff] }
 0x16a   : > { %2030 = vmatprep.subr.mxu0 %v1401_v42 }
 0x16b   : > { %821 = vxpose.xlu0.b32.cont [12/16] (narrow) %v389_v44, 56 }
 0x16c   : > { %789 = vxpose.xlu1.b32.cont [12/16] (narrow) %v373_v48, 56  ;;  %v1529_v48 = vld [vmem:[%s3044_s10 + $0x688] sm:$0xff] }
 0x16d   : > { %2031 = vmatpush1.xpose.msra.mxu0 %v1400_v49  ;;  %v414_v49 = vld [vmem:[%s4680_s0 + $0x5a0] sm:$0xff] }
 0x16e   : > { %2032 = vmatprep.subr.mxu0 %v1383_v50  ;;  %v398_v50 = vld [vmem:[%s4680_s0 + $0x520] sm:$0xff] }
 0x16f   : > { %822 = vxpose.xlu0.b32.cont [13/16] (narrow) %v390_v51, 56 }
 0x170   : > { %790 = vxpose.xlu1.b32.cont [13/16] (narrow) %v374_v47, 56 }
 0x171   : > { %2033 = vmatpush1.xpose.msra.mxu0 %v1382_v45  ;;  %v1528_v45 = vld [vmem:[%s3044_s10 + $0x680] sm:$0xff] }
 0x172   : > { %2034 = vmatprep.subr.mxu0 %v1365_v52 }
 0x173   : > { %823 = vxpose.xlu0.b32.cont [14/16] (narrow) %v391_v53, 56 }
 0x174   : > { %791 = vxpose.xlu1.b32.cont [14/16] (narrow) %v375_v54, 56  ;;  %v1511_v54 = vld [vmem:[%s3044_s10 + $0x5f8] sm:$0xff] }
 0x175   : > { %2035 = vmatpush1.xpose.msra.mxu0 %v1364_v55  ;;  %v415_v55 = vld [vmem:[%s4680_s0 + $0x5a8] sm:$0xff] }
 0x176   : > { %2036 = vmatprep.subr.mxu0 %v1347_v56  ;;  %v399_v56 = vld [vmem:[%s4680_s0 + $0x528] sm:$0xff] }
 0x177   : > { %824 = vxpose.xlu0.b32.cont [15/16] (narrow) %v392_v57, 56 }
 0x178   : > { %792 = vxpose.xlu1.b32.cont [15/16] (narrow) %v376_v58, 56 }
 0x179   : > { %2037 = vmatpush1.xpose.msra.mxu0 %v1346_v61  ;;  %v1510_v61 = vld [vmem:[%s3044_s10 + $0x5f0] sm:$0xff] }
 0x17a   : > { %2038 = vmatprep.subr.mxu0 %v1329_v62 }
 0x17b   : > { %825 = vxpose.xlu0.b32.end [16/16] (narrow) %v393_v63, 56  ;;  %v762_v3 = vpop.trf.xlu0 }
 0x17c   : > { %793 = vxpose.xlu1.b32.end [16/16] (narrow) %v377_v0, 56  ;;  %v730_v4 = vpop.trf.xlu1  ;;  %v1201_v7 = vmul.f32 %v3778_v43, %v762_v3  ;;  %v1493_v0 = vld [vmem:[%s3044_s10 + $0x568] sm:$0xff] }
 0x17d   : > { %v1200_v8 = vmul.f32 %v3782_v2, %v730_v4  ;;  %2039 = vmatpush1.xpose.msra.mxu0 %v1328_v46  ;;  %v400_v46 = vld [vmem:[%s4680_s0 + $0x530] sm:$0xff] }
 0x17e   : > { %1972 = vmatprep.mubr.f32.mxu1 %v1201_v7  ;;  %2208 = vmatprep.subr.mxu0 %v1603_v10  ;;  %v417_v7 = vld [vmem:[%s4680_s0 + $0x5b8] sm:$0xff]  ;;  %v402_v10 = vld [vmem:[%s4680_s0 + $0x540] sm:$0xff] }
 0x17f   : > { %874 = vxpose.xlu0.b32.start [1/16] (narrow) %v410_v5, 56  ;;  %v763_v11 = vpop.trf.xlu0  ;;  %1973 = vmatmul.mubr.f32.vlgmr.msra.gmra.mxu1 %v1200_v8  ;;  %v1492_v5 = vld [vmem:[%s3044_s10 + $0x560] sm:$0xff]  ;;  %v1457_v8 = vld [vmem:[%s3044_s10 + $0x448] sm:$0xff] }
 0x180   : > { %842 = vxpose.xlu1.b32.start [1/16] (narrow) %v394_v6, 56  ;;  %v731_v12 = vpop.trf.xlu1  ;;  %v1219_v18 = vmul.f32 %v3778_v43, %v763_v11  ;;  %2109 = vmatpush1.xpose.msra.mxu1 %v1600_v9  ;;  %v1475_v6 = vld [vmem:[%s3044_s10 + $0x4d8] sm:$0xff]  ;;  %v418_v9 = vld [vmem:[%s4680_s0 + $0x5c0] sm:$0xff]  ;;  %v1456_v11 = vld [vmem:[%s3044_s10 + $0x440] sm:$0xff] }
 0x181   : > { %v1218_v21 = vmul.f32 %v3782_v2, %v731_v12  ;;  %2110 = vmatprep.subr.mxu1 %v1583_v15  ;;  %v1439_v12 = vld [vmem:[%s3044_s10 + $0x3b8] sm:$0xff] }
 0x182   : > { %1977 = vmatprep.mubr.f32.mxu1 %v1219_v18  ;;  %v419_v15 = vld [vmem:[%s4680_s0 + $0x5c8] sm:$0xff]  ;;  %v1421_v18 = vld [vmem:[%s3044_s10 + $0x328] sm:$0xff] }
 0x183   : > { %875 = vxpose.xlu0.b32.cont [2/16] (narrow) %v411_v16, 56  ;;  %v764_v23 = vpop.trf.xlu0  ;;  %1978 = vmatmul.mubr.f32.gmra.mxu1 %v1218_v21  ;;  %v403_v16 = vld [vmem:[%s4680_s0 + $0x548] sm:$0xff]  ;;  %v420_v21 = vld [vmem:[%s4680_s0 + $0x5d0] sm:$0xff] }
 0x184   : > { %843 = vxpose.xlu1.b32.cont [2/16] (narrow) %v395_v17, 56  ;;  %v732_v24 = vpop.trf.xlu1  ;;  %v1237_v26 = vmul.f32 %v3778_v43, %v764_v23  ;;  %2111 = vmatpush1.xpose.msra.mxu1 %v1582_v22  ;;  %v1438_v17 = vld [vmem:[%s3044_s10 + $0x3b0] sm:$0xff]  ;;  %v404_v22 = vld [vmem:[%s4680_s0 + $0x550] sm:$0xff] }
 0x185   : > { %v1236_v36 = vmul.f32 %v3782_v2, %v732_v24  ;;  %2112 = vmatprep.subr.mxu1 %v1565_v20  ;;  %v1420_v23 = vld [vmem:[%s3044_s10 + $0x320] sm:$0xff]  ;;  %v1403_v24 = vld [vmem:[%s3044_s10 + $0x298] sm:$0xff] }
 0x186   : > { %1982 = vmatprep.mubr.f32.mxu1 %v1237_v26  ;;  %v421_v20 = vld [vmem:[%s4680_s0 + $0x5d8] sm:$0xff] }
 0x187   : > { %876 = vxpose.xlu0.b32.cont [3/16] (narrow) %v412_v19, 56  ;;  %v765_v28 = vpop.trf.xlu0  ;;  %1983 = vmatmul.mubr.f32.gmra.mxu1 %v1236_v36  ;;  %v405_v19 = vld [vmem:[%s4680_s0 + $0x558] sm:$0xff]  ;;  %v422_v36 = vld [vmem:[%s4680_s0 + $0x5e0] sm:$0xff] }
 0x188   : > { %844 = vxpose.xlu1.b32.cont [3/16] (narrow) %v396_v25, 56  ;;  %v733_v29 = vpop.trf.xlu1  ;;  %v1255_v39 = vmul.f32 %v3778_v43, %v765_v28  ;;  %2113 = vmatpush1.xpose.msra.mxu1 %v1564_v27  ;;  %v1402_v25 = vld [vmem:[%s3044_s10 + $0x290] sm:$0xff]  ;;  %v1385_v26 = vld [vmem:[%s3044_s10 + $0x208] sm:$0xff]  ;;  %v1384_v28 = vld [vmem:[%s3044_s10 + $0x200] sm:$0xff] }
 0x189   : > { %v1254_v40 = vmul.f32 %v3782_v2, %v733_v29  ;;  %2114 = vmatprep.subr.mxu1 %v1547_v30  ;;  %v406_v27 = vld [vmem:[%s4680_s0 + $0x560] sm:$0xff]  ;;  %v1367_v29 = vld [vmem:[%s3044_s10 + $0x178] sm:$0xff] }
 0x18a   : > { %1987 = vmatprep.mubr.f32.mxu1 %v1255_v39  ;;  %v423_v30 = vld [vmem:[%s4680_s0 + $0x5e8] sm:$0xff]  ;;  %v1349_v39 = vld [vmem:[%s3044_s10 + $0xe8] sm:$0xff] }
 0x18b   : > { %877 = vxpose.xlu0.b32.cont [4/16] (narrow) %v413_v32, 56  ;;  %v766_v42 = vpop.trf.xlu0  ;;  %1988 = vmatmul.mubr.f32.gmra.mxu1 %v1254_v40  ;;  %v407_v32 = vld [vmem:[%s4680_s0 + $0x568] sm:$0xff]  ;;  %v424_v40 = vld [vmem:[%s4680_s0 + $0x5f0] sm:$0xff] }
 0x18c   : > { %845 = vxpose.xlu1.b32.cont [4/16] (narrow) %v397_v38, 56  ;;  %v734_v44 = vpop.trf.xlu1  ;;  %v1273_v51 = vmul.f32 %v3778_v43, %v766_v42  ;;  %2115 = vmatpush1.xpose.msra.mxu1 %v1546_v41  ;;  %v1366_v38 = vld [vmem:[%s3044_s10 + $0x170] sm:$0xff]  ;;  %v408_v41 = vld [vmem:[%s4680_s0 + $0x570] sm:$0xff] }
 0x18d   : > { %v1272_v47 = vmul.f32 %v3782_v2, %v734_v44  ;;  %2116 = vmatprep.subr.mxu1 %v1529_v48  ;;  %v3918_v42 = vld [vmem:[#allocation2 + $0x8] sm:$0xff]  ;;  %v1348_v44 = vld [vmem:[%s3044_s10 + $0xe0] sm:$0xff] }
 0x18e   : > { %1992 = vmatprep.mubr.f32.mxu1 %v1273_v51  ;;  %v1331_v48 = vld [vmem:[%s3044_s10 + $0x58] sm:$0xff]  ;;  %v409_v51 = vld [vmem:[%s4680_s0 + $0x578] sm:$0xff] }
 0x18f   : > { %878 = vxpose.xlu0.b32.cont [5/16] (narrow) %v414_v49, 56  ;;  %v767_v52 = vpop.trf.xlu0  ;;  %1993 = vmatmul.mubr.f32.gmra.mxu1 %v1272_v47  ;;  %v425_v49 = vld [vmem:[%s4680_s0 + $0x5f8] sm:$0xff]  ;;  %v3934_v47 = vrot.slane %v3918_v42, %v3283_v37 }
 0x190   : > { %846 = vxpose.xlu1.b32.cont [5/16] (narrow) %v398_v50, 56  ;;  %v735_v53 = vpop.trf.xlu1  ;;  %v1291_v57 = vmul.f32 %v3778_v43, %v767_v52  ;;  %2117 = vmatpush1.xpose.msra.mxu1 %v1528_v45  ;;  %v3927_v50 = vrot.slane %v3918_v42, %v3278_v35  ;;  %v1330_v45 = vld [vmem:[%s3044_s10 + $0x50] sm:$0xff] }
 0x191   : > { %v1290_v58 = vmul.f32 %v3782_v2, %v735_v53  ;;  %2118 = vmatprep.subr.mxu1 %v1511_v54 }
 0x192   : > { %1997 = vmatprep.mubr.f32.mxu1 %v1291_v57  ;;  %v426_v57 = vld [vmem:[%s4680_s0 + $0x600] sm:$0xff] }
 0x193   : > { %879 = vxpose.xlu0.b32.cont [6/16] (narrow) %v415_v55, 56  ;;  %v768_v62 = vpop.trf.xlu0  ;;  %1998 = vmatmul.mubr.f32.gmra.mxu1 %v1290_v58  ;;  %v1602_v58 = vld [vmem:[%s3044_s10 + $0x8d0] sm:$0xff] }
 0x194   : > { %847 = vxpose.xlu1.b32.cont [6/16] (narrow) %v399_v56, 56  ;;  %v736_v63 = vpop.trf.xlu1  ;;  %v1309_v3 = vmul.f32 %v3778_v43, %v768_v62  ;;  %2119 = vmatpush1.xpose.msra.mxu1 %v1510_v61  ;;  %v401_v43 = vld [vmem:[%s4680_s0 + $0x538] sm:$0xff]  ;;  %v442_v56 = vld [vmem:[%s4680_s0 + $0x680] sm:$0xff] }
 0x195   : > { %v1308_v4 = vmul.f32 %v3782_v2, %v736_v63  ;;  %2120 = vmatprep.subr.mxu1 %v1493_v0  ;;  %v1474_v2 = vld [vmem:[%s3044_s10 + $0x4d0] sm:$0xff]  ;;  %v1585_v61 = vld [vmem:[%s3044_s10 + $0x848] sm:$0xff] }
 0x196   : > { %2002 = vmatprep.mubr.f32.mxu1 %v1309_v3  ;;  %v1605_v62 = vld [vmem:[%s3044_s10 + $0x8e8] sm:$0xff]  ;;  %v443_v3 = vld [vmem:[%s4680_s0 + $0x688] sm:$0xff] }
 0x197   : > { %880 = vxpose.xlu0.b32.cont [7/16] (narrow) %v416_v1, 56  ;;  %2003 = vmatmul.mubr.f32.gmra.mxu1 %v1308_v4  ;;  %v427_v4 = vld [vmem:[%s4680_s0 + $0x608] sm:$0xff] }
 0x198   : > { %848 = vxpose.xlu1.b32.cont [7/16] (narrow) %v400_v46, 56  ;;  %2121 = vmatpush1.xpose.msra.mxu1 %v1492_v5  ;;  %v1584_v5 = vld [vmem:[%s3044_s10 + $0x840] sm:$0xff] }
 0x199   : > { %2122 = vmatprep.subr.mxu1 %v1475_v6  ;;  %v1567_v6 = vld [vmem:[%s3044_s10 + $0x7b8] sm:$0xff] }
 0x19b   : > { %881 = vxpose.xlu0.b32.cont [8/16] (narrow) %v417_v7, 56 }
 0x19c   : > { %849 = vxpose.xlu1.b32.cont [8/16] (narrow) %v401_v43, 56  ;;  %2123 = vmatpush1.xpose.msra.mxu1 %v1474_v2 }
 0x19d   : > { %2124 = vmatprep.subr.mxu1 %v1457_v8 }
 0x19f   : > { %882 = vxpose.xlu0.b32.cont [9/16] (narrow) %v418_v9, 56  ;;  %v444_v9 = vld [vmem:[%s4680_s0 + $0x690] sm:$0xff] }
 0x1a0   : > { %850 = vxpose.xlu1.b32.cont [9/16] (narrow) %v402_v10, 56  ;;  %2125 = vmatpush1.xpose.msra.mxu1 %v1456_v11  ;;  %v428_v10 = vld [vmem:[%s4680_s0 + $0x610] sm:$0xff]  ;;  %v1566_v11 = vld [vmem:[%s3044_s10 + $0x7b0] sm:$0xff] }
 0x1a1   : > { %2126 = vmatprep.subr.mxu1 %v1439_v12  ;;  %v1549_v12 = vld [vmem:[%s3044_s10 + $0x728] sm:$0xff] }
 0x1a3   : > { %883 = vxpose.xlu0.b32.cont [10/16] (narrow) %v419_v15, 56  ;;  %v3968_v15 = vpop.f32.mrf.mxu0 }
 0x1a4   : > { %851 = vxpose.xlu1.b32.cont [10/16] (narrow) %v403_v16, 56  ;;  %2127 = vmatpush1.xpose.msra.mxu1 %v1438_v17 }
 0x1a5   : > { %2128 = vmatprep.subr.mxu1 %v1421_v18 }
 0x1a7   : > { %884 = vxpose.xlu0.b32.cont [11/16] (narrow) %v420_v21, 56 }
 0x1a8   : > { %852 = vxpose.xlu1.b32.cont [11/16] (narrow) %v404_v22, 56  ;;  %2129 = vmatpush1.xpose.msra.mxu1 %v1420_v23  ;;  %v445_v22 = vld [vmem:[%s4680_s0 + $0x698] sm:$0xff]  ;;  %v1676_v23 = vpop.f32.mrf.mxu0 }
 0x1a9   : > { %2130 = vmatprep.subr.mxu1 %v1403_v24  ;;  %v429_v24 = vld [vmem:[%s4680_s0 + $0x618] sm:$0xff] }
 0x1aa   : > { %v1440_v23 = vld [vmem:[%s3044_s10 + $0x3c0] sm:$0xff] }
 0x1ab   : > { %885 = vxpose.xlu0.b32.cont [12/16] (narrow) %v421_v20, 56  ;;  %v1548_v20 = vld [vmem:[%s3044_s10 + $0x720] sm:$0xff] }
 0x1ac   : > { %853 = vxpose.xlu1.b32.cont [12/16] (narrow) %v405_v19, 56  ;;  %2131 = vmatpush1.xpose.msra.mxu1 %v1402_v25  ;;  %v1531_v19 = vld [vmem:[%s3044_s10 + $0x698] sm:$0xff]  ;;  %v3980_v25 = vpop.f32.mrf.mxu0 }
 0x1ad   : > { %2132 = vmatprep.subr.mxu1 %v1385_v26 }
 0x1af   : > { %886 = vxpose.xlu0.b32.cont [13/16] (narrow) %v422_v36, 56 }
 0x1b0   : > { %854 = vxpose.xlu1.b32.cont [13/16] (narrow) %v406_v27, 56  ;;  %2133 = vmatpush1.xpose.msra.mxu1 %v1384_v28 }
 0x1b1   : > { %2134 = vmatprep.subr.mxu1 %v1367_v29  ;;  %v446_v29 = vld [vmem:[%s4680_s0 + $0x6a0] sm:$0xff] }
 0x1b3   : > { %887 = vxpose.xlu0.b32.cont [14/16] (narrow) %v423_v30, 56  ;;  %v1681_v30 = vpop.f32.mrf.mxu0 }
 0x1b4   : > { %855 = vxpose.xlu1.b32.cont [14/16] (narrow) %v407_v32, 56  ;;  %2135 = vmatpush1.xpose.msra.mxu1 %v1366_v38  ;;  %v430_v32 = vld [vmem:[%s4680_s0 + $0x620] sm:$0xff] }
 0x1b5   : > { %2136 = vmatprep.subr.mxu1 %v1349_v39  ;;  %v1530_v38 = vld [vmem:[%s3044_s10 + $0x690] sm:$0xff]  ;;  %v1513_v39 = vld [vmem:[%s3044_s10 + $0x608] sm:$0xff] }
 0x1b7   : > { %888 = vxpose.xlu0.b32.cont [15/16] (narrow) %v424_v40, 56  ;;  %v3992_v40 = vpop.f32.mrf.mxu0 }
 0x1b8   : > { %856 = vxpose.xlu1.b32.cont [15/16] (narrow) %v408_v41, 56  ;;  %2137 = vmatpush1.xpose.msra.mxu1 %v1348_v44 }
 0x1b9   : > { %2138 = vmatprep.subr.mxu1 %v1331_v48 }
 0x1bb   : > { %889 = vxpose.xlu0.b32.end [16/16] (narrow) %v425_v49, 56  ;;  %v826_v52 = vpop.trf.xlu0 }
 0x1bc   : > { %857 = vxpose.xlu1.b32.end [16/16] (narrow) %v409_v51, 56  ;;  %v794_v53 = vpop.trf.xlu1  ;;  %v1203_v54 = vmul.f32 %v3927_v50, %v826_v52  ;;  %2139 = vmatpush1.xpose.msra.mxu1 %v1330_v45  ;;  %v447_v51 = vld [vmem:[%s4680_s0 + $0x6a8] sm:$0xff]  ;;  %v1686_v45 = vpop.f32.mrf.mxu0 }
 0x1bd   : > { %v1202_v55 = vmul.f32 %v3934_v47, %v794_v53  ;;  %2308 = vmatprep.subr.mxu1 %v1605_v62  ;;  %v431_v52 = vld [vmem:[%s4680_s0 + $0x628] sm:$0xff]  ;;  %v1512_v53 = vld [vmem:[%s3044_s10 + $0x600] sm:$0xff]  ;;  %v438_v45 = vld [vmem:[%s4680_s0 + $0x660] sm:$0xff] }
 0x1be   : > { %2072 = vmatprep.mubr.f32.mxu0 %v1203_v54  ;;  %v1495_v54 = vld [vmem:[%s3044_s10 + $0x578] sm:$0xff] }
 0x1bf   : > { %938 = vxpose.xlu0.b32.start [1/16] (narrow) %v442_v56, 56  ;;  %2073 = vmatmul.mubr.f32.vlgmr.msra.gmra.mxu0 %v1202_v55  ;;  %v827_v63 = vpop.trf.xlu0  ;;  %v4004_v55 = vpop.f32.mrf.mxu0  ;;  %v448_v62 = vld [vmem:[%s4680_s0 + $0x6b0] sm:$0xff] }
 0x1c0   : > { %v795_v0 = vpop.trf.xlu1  ;;  %v1221_v1 = vmul.f32 %v3927_v50, %v827_v63  ;;  %906 = vxpose.xlu1.b32.start [1/16] (narrow) %v426_v57, 56  ;;  %2209 = vmatpush1.xpose.msra.mxu0 %v1602_v58 }
 0x1c1   : > { %v1220_v46 = vmul.f32 %v3934_v47, %v795_v0  ;;  %2210 = vmatprep.subr.mxu0 %v1585_v61  ;;  %v1691_v63 = vpop.f32.mrf.mxu0  ;;  %v432_v0 = vld [vmem:[%s4680_s0 + $0x630] sm:$0xff] }
 0x1c2   : > { %2077 = vmatprep.mubr.f32.mxu0 %v1221_v1  ;;  %v1494_v1 = vld [vmem:[%s3044_s10 + $0x570] sm:$0xff]  ;;  %v1351_v63 = vld [vmem:[%s3044_s10 + $0xf8] sm:$0xff] }
 0x1c3   : > { %939 = vxpose.xlu0.b32.cont [2/16] (narrow) %v443_v3, 56  ;;  %2078 = vmatmul.mubr.f32.gmra.mxu0 %v1220_v46  ;;  %v828_v7 = vpop.trf.xlu0  ;;  %v1477_v46 = vld [vmem:[%s3044_s10 + $0x4e8] sm:$0xff] }
 0x1c4   : > { %v796_v43 = vpop.trf.xlu1  ;;  %v1239_v2 = vmul.f32 %v3927_v50, %v828_v7  ;;  %907 = vxpose.xlu1.b32.cont [2/16] (narrow) %v427_v4, 56  ;;  %2211 = vmatpush1.xpose.msra.mxu0 %v1584_v5  ;;  %v433_v4 = vld [vmem:[%s4680_s0 + $0x638] sm:$0xff] }
 0x1c5   : > { %v1238_v8 = vmul.f32 %v3934_v47, %v796_v43  ;;  %2212 = vmatprep.subr.mxu0 %v1567_v6  ;;  %v1476_v5 = vld [vmem:[%s3044_s10 + $0x4e0] sm:$0xff]  ;;  %v1459_v6 = vld [vmem:[%s3044_s10 + $0x458] sm:$0xff]  ;;  %v450_v43 = vld [vmem:[%s4680_s0 + $0x6c0] sm:$0xff] }
 0x1c6   : > { %2082 = vmatprep.mubr.f32.mxu0 %v1239_v2  ;;  %v1774_v2 = vpop.f32.mrf.mxu1 }
 0x1c7   : > { %940 = vxpose.xlu0.b32.cont [3/16] (narrow) %v444_v9, 56  ;;  %2083 = vmatmul.mubr.f32.gmra.mxu0 %v1238_v8  ;;  %v829_v16 = vpop.trf.xlu0  ;;  %v434_v9 = vld [vmem:[%s4680_s0 + $0x640] sm:$0xff] }
 0x1c8   : > { %v797_v17 = vpop.trf.xlu1  ;;  %v1257_v18 = vmul.f32 %v3927_v50, %v829_v16  ;;  %908 = vxpose.xlu1.b32.cont [3/16] (narrow) %v428_v10, 56  ;;  %2213 = vmatpush1.xpose.msra.mxu0 %v1566_v11  ;;  %v1458_v10 = vld [vmem:[%s3044_s10 + $0x450] sm:$0xff]  ;;  %v4036_v11 = vadd.f32 %v1774_v2, %v3968_v15  ;;  %v1776_v16 = vpop.f32.mrf.mxu1  ;;  %v441_v2 = vld [vmem:[%s4680_s0 + $0x678] sm:$0xff] }
 0x1c9   : > { %v1256_v21 = vmul.f32 %v3934_v47, %v797_v17  ;;  %2214 = vmatprep.subr.mxu0 %v1549_v12  ;;  %v1441_v12 = vld [vmem:[%s3044_s10 + $0x3c8] sm:$0xff]  ;;  %v435_v15 = vld [vmem:[%s4680_s0 + $0x648] sm:$0xff] }
 0x1ca   : > { %2087 = vmatprep.mubr.f32.mxu0 %v1257_v18  ;;  %v451_v18 = vld [vmem:[%s4680_s0 + $0x6c8] sm:$0xff]  ;;  %v458_v16 = vld [vmem:[%s4680_s0 + $0x700] sm:$0xff] }
 0x1cb   : > { %941 = vxpose.xlu0.b32.cont [4/16] (narrow) %v445_v22, 56  ;;  %2088 = vmatmul.mubr.f32.gmra.mxu0 %v1256_v21  ;;  %v830_v26 = vpop.trf.xlu0  ;;  %v1779_v21 = vpop.f32.mrf.mxu1 }
 0x1cc   : > { %v798_v36 = vpop.trf.xlu1  ;;  %v1275_v27 = vmul.f32 %v3927_v50, %v830_v26  ;;  %909 = vxpose.xlu1.b32.cont [4/16] (narrow) %v429_v24, 56  ;;  %2215 = vmatpush1.xpose.msra.mxu0 %v1548_v20  ;;  %v4049_v24 = vadd.f32 %v1779_v21, %v3980_v25  ;;  %v1423_v20 = vld [vmem:[%s3044_s10 + $0x338] sm:$0xff] }
 0x1cd   : > { %v1274_v28 = vmul.f32 %v3934_v47, %v798_v36  ;;  %2216 = vmatprep.subr.mxu0 %v1531_v19  ;;  %v1781_v19 = vpop.f32.mrf.mxu1  ;;  %v452_v26 = vld [vmem:[%s4680_s0 + $0x6d0] sm:$0xff] }
 0x1ce   : > { %2092 = vmatprep.mubr.f32.mxu0 %v1275_v27  ;;  %v436_v27 = vld [vmem:[%s4680_s0 + $0x650] sm:$0xff]  ;;  %v475_v19 = vld [vmem:[%s4680_s0 + $0x788] sm:$0xff] }
 0x1cf   : > { %942 = vxpose.xlu0.b32.cont [5/16] (narrow) %v446_v29, 56  ;;  %2093 = vmatmul.mubr.f32.gmra.mxu0 %v1274_v28  ;;  %v831_v41 = vpop.trf.xlu0  ;;  %v1784_v36 = vpop.f32.mrf.mxu1  ;;  %v1422_v28 = vld [vmem:[%s3044_s10 + $0x330] sm:$0xff]  ;;  %v1405_v29 = vld [vmem:[%s3044_s10 + $0x2a8] sm:$0xff]  ;;  %v4135_v21 = vld [vmem:[%s3044_s10 + $0x8f8] sm:$0xff] }
 0x1d0   : > { %v799_v44 = vpop.trf.xlu1  ;;  %v1293_v48 = vmul.f32 %v3927_v50, %v831_v41  ;;  %910 = vxpose.xlu1.b32.cont [5/16] (narrow) %v430_v32, 56  ;;  %2217 = vmatpush1.xpose.msra.mxu0 %v1530_v38  ;;  %v4060_v25 = vadd.f32 %v1784_v36, %v3992_v40  ;;  %v453_v32 = vld [vmem:[%s4680_s0 + $0x6d8] sm:$0xff]  ;;  %v459_v36 = vld [vmem:[%s4680_s0 + $0x708] sm:$0xff] }
 0x1d1   : > { %v1292_v49 = vmul.f32 %v3934_v47, %v799_v44  ;;  %2218 = vmatprep.subr.mxu0 %v1513_v39  ;;  %v1786_v30 = vpop.f32.mrf.mxu1  ;;  %v437_v39 = vld [vmem:[%s4680_s0 + $0x658] sm:$0xff]  ;;  %v1387_v44 = vld [vmem:[%s3044_s10 + $0x218] sm:$0xff] }
 0x1d2   : > { %2097 = vmatprep.mubr.f32.mxu0 %v1293_v48  ;;  %v1404_v41 = vld [vmem:[%s3044_s10 + $0x2a0] sm:$0xff] }
 0x1d3   : > { %943 = vxpose.xlu0.b32.cont [6/16] (narrow) %v447_v51, 56  ;;  %2098 = vmatmul.mubr.f32.gmra.mxu0 %v1292_v49  ;;  %v832_v56 = vpop.trf.xlu0  ;;  %v1789_v38 = vpop.f32.mrf.mxu1  ;;  %v454_v49 = vld [vmem:[%s4680_s0 + $0x6e0] sm:$0xff] }
 0x1d4   : > { %v800_v57 = vpop.trf.xlu1  ;;  %v1311_v58 = vmul.f32 %v3927_v50, %v832_v56  ;;  %911 = vxpose.xlu1.b32.cont [6/16] (narrow) %v431_v52, 56  ;;  %2219 = vmatpush1.xpose.msra.mxu0 %v1512_v53  ;;  %v4016_v50 = vpop.f32.mrf.mxu0  ;;  %v4071_v40 = vadd.f32 %v1789_v38, %v4004_v55  ;;  %v1386_v52 = vld [vmem:[%s3044_s10 + $0x210] sm:$0xff] }
 0x1d5   : > { %v1310_v61 = vmul.f32 %v3934_v47, %v800_v57  ;;  %2220 = vmatprep.subr.mxu0 %v1495_v54  ;;  %v449_v47 = vld [vmem:[%s4680_s0 + $0x6b8] sm:$0xff]  ;;  %v1791_v48 = vpop.f32.mrf.mxu1  ;;  %v455_v56 = vld [vmem:[%s4680_s0 + $0x6e8] sm:$0xff] }
 0x1d6   : > { %2102 = vmatprep.mubr.f32.mxu0 %v1311_v58  ;;  %v1696_v3 = vpop.f32.mrf.mxu0  ;;  %v1369_v54 = vld [vmem:[%s3044_s10 + $0x188] sm:$0xff]  ;;  %v439_v58 = vld [vmem:[%s4680_s0 + $0x668] sm:$0xff]  ;;  %v460_v48 = vld [vmem:[%s4680_s0 + $0x710] sm:$0xff] }
 0x1d7   : > { %944 = vxpose.xlu0.b32.cont [7/16] (narrow) %v448_v62, 56  ;;  %2103 = vmatmul.mubr.f32.gmra.mxu0 %v1310_v61  ;;  %v1794_v51 = vpop.f32.mrf.mxu1  ;;  %v1368_v61 = vld [vmem:[%s3044_s10 + $0x180] sm:$0xff] }
 0x1d8   : > { %912 = vxpose.xlu1.b32.cont [7/16] (narrow) %v432_v0, 56  ;;  %2221 = vmatpush1.xpose.msra.mxu0 %v1494_v1  ;;  %v4026_v7 = vpop.f32.mrf.mxu0  ;;  %v4082_v53 = vadd.f32 %v1794_v51, %v4016_v50  ;;  %v456_v1 = vld [vmem:[%s4680_s0 + $0x6f0] sm:$0xff] }
 0x1d9   : > { %2222 = vmatprep.subr.mxu0 %v1477_v46  ;;  %v1796_v55 = vpop.f32.mrf.mxu1  ;;  %v440_v50 = vld [vmem:[%s4680_s0 + $0x670] sm:$0xff] }
 0x1da   : > { %v1701_v8 = vpop.f32.mrf.mxu0 }
 0x1db   : > { %945 = vxpose.xlu0.b32.cont [8/16] (narrow) %v449_v47, 56  ;;  %v1799_v57 = vpop.f32.mrf.mxu1  ;;  %v1350_v47 = vld [vmem:[%s3044_s10 + $0xf0] sm:$0xff]  ;;  %v1332_v8 = vld [vmem:[%s3044_s10 + $0x60] sm:$0xff] }
 0x1dc   : > { %913 = vxpose.xlu1.b32.cont [8/16] (narrow) %v433_v4, 56  ;;  %2223 = vmatpush1.xpose.msra.mxu0 %v1476_v5  ;;  %v4039_v17 = vpop.f32.mrf.mxu0  ;;  %v4093_v62 = vadd.f32 %v1799_v57, %v4026_v7  ;;  %v1333_v4 = vld [vmem:[%s3044_s10 + $0x68] sm:$0xff]  ;;  %v4113_v7 = vrot.slane %v3918_v42, %v1118_v34 }
 0x1dd   : > { %2224 = vmatprep.subr.mxu0 %v1459_v6  ;;  %v1801_v0 = vpop.f32.mrf.mxu1  ;;  %v457_v6 = vld [vmem:[%s4680_s0 + $0x6f8] sm:$0xff] }
 0x1de   : > { %v1706_v22 = vpop.f32.mrf.mxu0 }
 0x1df   : > { %946 = vxpose.xlu0.b32.cont [9/16] (narrow) %v450_v43, 56  ;;  %v1804_v46 = vpop.f32.mrf.mxu1  ;;  %v4118_v43 = vrot.slane %v3918_v42, %v1114_v33  ;;  %v474_v33 = vld [vmem:[%s4680_s0 + $0x780] sm:$0xff] }
 0x1e0   : > { %914 = vxpose.xlu1.b32.cont [9/16] (narrow) %v434_v9, 56  ;;  %2225 = vmatpush1.xpose.msra.mxu0 %v1458_v10  ;;  %v4104_v3 = vadd.f32 %v1804_v46, %v4039_v17  ;;  %v1604_v17 = vld [vmem:[%s3044_s10 + $0x8e0] sm:$0xff] }
 0x1e1   : > { %2226 = vmatprep.subr.mxu0 %v1441_v12  ;;  %v1806_v5 = vpop.f32.mrf.mxu1 }
 0x1e3   : > { %947 = vxpose.xlu0.b32.cont [10/16] (narrow) %v451_v18, 56  ;;  %v1587_v18 = vld [vmem:[%s3044_s10 + $0x858] sm:$0xff] }
 0x1e4   : > { %915 = vxpose.xlu1.b32.cont [10/16] (narrow) %v435_v15, 56  ;;  %2227 = vmatpush1.xpose.msra.mxu0 %v1440_v23 }
 0x1e5   : > { %2228 = vmatprep.subr.mxu0 %v1423_v20 }
 0x1e7   : > { %948 = vxpose.xlu0.b32.cont [11/16] (narrow) %v452_v26, 56 }
 0x1e8   : > { %916 = vxpose.xlu1.b32.cont [11/16] (narrow) %v436_v27, 56  ;;  %2229 = vmatpush1.xpose.msra.mxu0 %v1422_v28  ;;  %v1586_v27 = vld [vmem:[%s3044_s10 + $0x850] sm:$0xff] }
 0x1e9   : > { %2230 = vmatprep.subr.mxu0 %v1405_v29  ;;  %v1569_v29 = vld [vmem:[%s3044_s10 + $0x7c8] sm:$0xff] }
 0x1eb   : > { %949 = vxpose.xlu0.b32.cont [12/16] (narrow) %v453_v32, 56 }
 0x1ec   : > { %917 = vxpose.xlu1.b32.cont [12/16] (narrow) %v437_v39, 56  ;;  %2231 = vmatpush1.xpose.msra.mxu0 %v1404_v41 }
 0x1ed   : > { %2232 = vmatprep.subr.mxu0 %v1387_v44 }
 0x1ef   : > { %950 = vxpose.xlu0.b32.cont [13/16] (narrow) %v454_v49, 56  ;;  %v1568_v49 = vld [vmem:[%s3044_s10 + $0x7c0] sm:$0xff] }
 0x1f0   : > { %918 = vxpose.xlu1.b32.cont [13/16] (narrow) %v438_v45, 56  ;;  %2233 = vmatpush1.xpose.msra.mxu0 %v1386_v52  ;;  %v1551_v45 = vld [vmem:[%s3044_s10 + $0x738] sm:$0xff] }
 0x1f1   : > { %2234 = vmatprep.subr.mxu0 %v1369_v54 }
 0x1f3   : > { %951 = vxpose.xlu0.b32.cont [14/16] (narrow) %v455_v56, 56 }
 0x1f4   : > { %919 = vxpose.xlu1.b32.cont [14/16] (narrow) %v439_v58, 56  ;;  %2235 = vmatpush1.xpose.msra.mxu0 %v1368_v61  ;;  %v477_v58 = vld [vmem:[%s4680_s0 + $0x798] sm:$0xff] }
 0x1f5   : > { %2236 = vmatprep.subr.mxu0 %v1351_v63  ;;  %v461_v61 = vld [vmem:[%s4680_s0 + $0x718] sm:$0xff]  ;;  %v1550_v63 = vld [vmem:[%s3044_s10 + $0x730] sm:$0xff] }
 0x1f7   : > { %952 = vxpose.xlu0.b32.cont [15/16] (narrow) %v456_v1, 56  ;;  %v1533_v1 = vld [vmem:[%s3044_s10 + $0x6a8] sm:$0xff] }
 0x1f8   : > { %920 = vxpose.xlu1.b32.cont [15/16] (narrow) %v440_v50, 56  ;;  %2237 = vmatpush1.xpose.msra.mxu0 %v1350_v47 }
 0x1f9   : > { %2238 = vmatprep.subr.mxu0 %v1333_v4 }
 0x1fb   : > { %953 = vxpose.xlu0.b32.end [16/16] (narrow) %v457_v6, 56  ;;  %v890_v9 = vpop.trf.xlu0  ;;  %v478_v6 = vld [vmem:[%s4680_s0 + $0x7a0] sm:$0xff] }
 0x1fc   : > { %v858_v10 = vpop.trf.xlu1  ;;  %v1205_v34 = vmul.f32 %v4113_v7, %v890_v9  ;;  %921 = vxpose.xlu1.b32.end [16/16] (narrow) %v441_v2, 56  ;;  %2239 = vmatpush1.xpose.msra.mxu0 %v1332_v8  ;;  %v462_v2 = vld [vmem:[%s4680_s0 + $0x720] sm:$0xff]  ;;  %v1532_v8 = vld [vmem:[%s3044_s10 + $0x6a0] sm:$0xff] }
 0x1fd   : > { %v1204_v12 = vmul.f32 %v4118_v43, %v858_v10  ;;  %2408 = vmatprep.subr.mxu0 %v4135_v21  ;;  %v1515_v10 = vld [vmem:[%s3044_s10 + $0x618] sm:$0xff] }
 0x1fe   : > { %2172 = vmatprep.mubr.f32.mxu1 %v1205_v34 }
 0x1ff   : > { %1002 = vxpose.xlu0.b32.start [1/16] (narrow) %v474_v33, 56  ;;  %2173 = vmatmul.mubr.f32.vlgmr.msra.gmra.mxu1 %v1204_v12  ;;  %v891_v22 = vpop.trf.xlu0 }
 0x200   : > { %v859_v15 = vpop.trf.xlu1  ;;  %v1223_v23 = vmul.f32 %v4113_v7, %v891_v22  ;;  %970 = vxpose.xlu1.b32.start [1/16] (narrow) %v458_v16, 56  ;;  %2309 = vmatpush1.xpose.msra.mxu1 %v1604_v17  ;;  %v1874_v26 = vpop.f32.mrf.mxu0  ;;  %v463_v22 = vld [vmem:[%s4680_s0 + $0x728] sm:$0xff] }
 0x201   : > { %v1222_v20 = vmul.f32 %v4118_v43, %v859_v15  ;;  %2310 = vmatprep.subr.mxu1 %v1587_v18  ;;  %v4147_v28 = vadd.f32 %v1874_v26, %v4036_v11  ;;  %v476_v11 = vld [vmem:[%s4680_s0 + $0x790] sm:$0xff]  ;;  %v479_v18 = vld [vmem:[%s4680_s0 + $0x7a8] sm:$0xff] }
 0x202   : > { %2177 = vmatprep.mubr.f32.mxu1 %v1223_v23  ;;  %v1876_v30 = vpop.f32.mrf.mxu0  ;;  %v1514_v15 = vld [vmem:[%s3044_s10 + $0x610] sm:$0xff] }
 0x203   : > { %1003 = vxpose.xlu0.b32.cont [2/16] (narrow) %v475_v19, 56  ;;  %2178 = vmatmul.mubr.f32.gmra.mxu1 %v1222_v20  ;;  %v892_v32 = vpop.trf.xlu0  ;;  %v1497_v20 = vld [vmem:[%s3044_s10 + $0x588] sm:$0xff]  ;;  %v480_v30 = vld [vmem:[%s4680_s0 + $0x7b0] sm:$0xff] }
 0x204   : > { %v860_v38 = vpop.trf.xlu1  ;;  %v1241_v39 = vmul.f32 %v4113_v7, %v892_v32  ;;  %971 = vxpose.xlu1.b32.cont [2/16] (narrow) %v459_v36, 56  ;;  %2311 = vmatpush1.xpose.msra.mxu1 %v1586_v27  ;;  %v1879_v44 = vpop.f32.mrf.mxu0  ;;  %v464_v32 = vld [vmem:[%s4680_s0 + $0x730] sm:$0xff] }
 0x205   : > { %v1240_v41 = vmul.f32 %v4118_v43, %v860_v38  ;;  %2312 = vmatprep.subr.mxu1 %v1569_v29  ;;  %v4161_v51 = vadd.f32 %v1879_v44, %v4049_v24  ;;  %v1496_v38 = vld [vmem:[%s3044_s10 + $0x580] sm:$0xff] }
 0x206   : > { %2182 = vmatprep.mubr.f32.mxu1 %v1241_v39  ;;  %v1881_v52 = vpop.f32.mrf.mxu0  ;;  %v465_v44 = vld [vmem:[%s4680_s0 + $0x738] sm:$0xff] }
 0x207   : > { %1004 = vxpose.xlu0.b32.cont [3/16] (narrow) %v476_v11, 56  ;;  %2183 = vmatmul.mubr.f32.gmra.mxu1 %v1240_v41  ;;  %v893_v54 = vpop.trf.xlu0  ;;  %v481_v41 = vld [vmem:[%s4680_s0 + $0x7b8] sm:$0xff]  ;;  %v482_v52 = vld [vmem:[%s4680_s0 + $0x7c0] sm:$0xff] }
 0x208   : > { %v861_v55 = vpop.trf.xlu1  ;;  %v1259_v56 = vmul.f32 %v4113_v7, %v893_v54  ;;  %972 = vxpose.xlu1.b32.cont [3/16] (narrow) %v460_v48, 56  ;;  %2313 = vmatpush1.xpose.msra.mxu1 %v1568_v49  ;;  %v1884_v24 = vpop.f32.mrf.mxu0  ;;  %v1461_v49 = vld [vmem:[%s3044_s10 + $0x468] sm:$0xff] }
 0x209   : > { %v1258_v57 = vmul.f32 %v4118_v43, %v861_v55  ;;  %2314 = vmatprep.subr.mxu1 %v1551_v45  ;;  %v4174_v0 = vadd.f32 %v1884_v24, %v4060_v25  ;;  %v466_v54 = vld [vmem:[%s4680_s0 + $0x740] sm:$0xff]  ;;  %v1460_v55 = vld [vmem:[%s3044_s10 + $0x460] sm:$0xff] }
 0x20a   : > { %2187 = vmatprep.mubr.f32.mxu1 %v1259_v56  ;;  %v1886_v46 = vpop.f32.mrf.mxu0  ;;  %v483_v56 = vld [vmem:[%s4680_s0 + $0x7c8] sm:$0xff]  ;;  %v1425_v24 = vld [vmem:[%s3044_s10 + $0x348] sm:$0xff] }
 0x20b   : > { %1005 = vxpose.xlu0.b32.cont [4/16] (narrow) %v477_v58, 56  ;;  %2188 = vmatmul.mubr.f32.gmra.mxu1 %v1258_v57  ;;  %v894_v50 = vpop.trf.xlu0  ;;  %v467_v57 = vld [vmem:[%s4680_s0 + $0x748] sm:$0xff] }
 0x20c   : > { %v862_v47 = vpop.trf.xlu1  ;;  %v1277_v4 = vmul.f32 %v4113_v7, %v894_v50  ;;  %973 = vxpose.xlu1.b32.cont [4/16] (narrow) %v461_v61, 56  ;;  %2315 = vmatpush1.xpose.msra.mxu1 %v1550_v63  ;;  %v1889_v25 = vpop.f32.mrf.mxu0  ;;  %v1442_v58 = vld [vmem:[%s3044_s10 + $0x3d0] sm:$0xff]  ;;  %v484_v61 = vld [vmem:[%s4680_s0 + $0x7d0] sm:$0xff]  ;;  %v485_v50 = vld [vmem:[%s4680_s0 + $0x7d8] sm:$0xff] }
 0x20d   : > { %v1276_v5 = vmul.f32 %v4118_v43, %v862_v47  ;;  %2316 = vmatprep.subr.mxu1 %v1533_v1  ;;  %v4187_v9 = vadd.f32 %v1889_v25, %v4071_v40  ;;  %v468_v63 = vld [vmem:[%s4680_s0 + $0x750] sm:$0xff]  ;;  %v469_v47 = vld [vmem:[%s4680_s0 + $0x758] sm:$0xff]  ;;  %v470_v25 = vld [vmem:[%s4680_s0 + $0x760] sm:$0xff] }
 0x20e   : > { %2192 = vmatprep.mubr.f32.mxu1 %v1277_v4  ;;  %v1891_v34 = vpop.f32.mrf.mxu0  ;;  %v1424_v1 = vld [vmem:[%s3044_s10 + $0x340] sm:$0xff]  ;;  %v1407_v46 = vld [vmem:[%s3044_s10 + $0x2b8] sm:$0xff]  ;;  %v1406_v4 = vld [vmem:[%s3044_s10 + $0x2b0] sm:$0xff] }
 0x20f   : > { %1006 = vxpose.xlu0.b32.cont [5/16] (narrow) %v478_v6, 56  ;;  %2193 = vmatmul.mubr.f32.gmra.mxu1 %v1276_v5  ;;  %v895_v12 = vpop.trf.xlu0  ;;  %v1389_v5 = vld [vmem:[%s3044_s10 + $0x228] sm:$0xff]  ;;  %v471_v34 = vld [vmem:[%s4680_s0 + $0x768] sm:$0xff] }
 0x210   : > { %v863_v33 = vpop.trf.xlu1  ;;  %v1295_v16 = vmul.f32 %v4113_v7, %v895_v12  ;;  %974 = vxpose.xlu1.b32.cont [5/16] (narrow) %v462_v2, 56  ;;  %2317 = vmatpush1.xpose.msra.mxu1 %v1532_v8  ;;  %v1894_v40 = vpop.f32.mrf.mxu0  ;;  %v486_v6 = vld [vmem:[%s4680_s0 + $0x7e0] sm:$0xff]  ;;  %v1388_v2 = vld [vmem:[%s3044_s10 + $0x220] sm:$0xff]  ;;  %v1371_v8 = vld [vmem:[%s3044_s10 + $0x198] sm:$0xff] }
 0x211   : > { %v1294_v17 = vmul.f32 %v4118_v43, %v863_v33  ;;  %2318 = vmatprep.subr.mxu1 %v1515_v10  ;;  %v4200_v23 = vadd.f32 %v1894_v40, %v4082_v53  ;;  %v487_v10 = vld [vmem:[%s4680_s0 + $0x7e8] sm:$0xff]  ;;  %v1353_v33 = vld [vmem:[%s3044_s10 + $0x108] sm:$0xff] }
 0x212   : > { %2197 = vmatprep.mubr.f32.mxu1 %v1295_v16  ;;  %v1896_v19 = vpop.f32.mrf.mxu0  ;;  %v1370_v12 = vld [vmem:[%s3044_s10 + $0x190] sm:$0xff]  ;;  %v488_v16 = vld [vmem:[%s4680_s0 + $0x7f0] sm:$0xff] }
 0x213   : > { %1007 = vxpose.xlu0.b32.cont [6/16] (narrow) %v479_v18, 56  ;;  %2198 = vmatmul.mubr.f32.gmra.mxu1 %v1294_v17  ;;  %v896_v26 = vpop.trf.xlu0  ;;  %v472_v17 = vld [vmem:[%s4680_s0 + $0x770] sm:$0xff]  ;;  %v4297_v19 = vrot.slane %v3918_v42, %v1122_v14  ;;  %v490_v14 = vld [vmem:[%s4680_s0 + $0x800] sm:$0xff] }
 0x214   : > { %v864_v36 = vpop.trf.xlu1  ;;  %v1313_v27 = vmul.f32 %v4113_v7, %v896_v26  ;;  %975 = vxpose.xlu1.b32.cont [6/16] (narrow) %v463_v22, 56  ;;  %2319 = vmatpush1.xpose.msra.mxu1 %v1514_v15  ;;  %v1899_v53 = vpop.f32.mrf.mxu0  ;;  %v1479_v7 = vld [vmem:[%s3044_s10 + $0x4f8] sm:$0xff]  ;;  %v1352_v18 = vld [vmem:[%s3044_s10 + $0x100] sm:$0xff]  ;;  %v4289_v15 = vrot.slane %v3918_v42, %v1126_v13  ;;  %v1334_v26 = vld [vmem:[%s3044_s10 + $0x70] sm:$0xff] }
 0x215   : > { %v1312_v29 = vmul.f32 %v4118_v43, %v864_v36  ;;  %2320 = vmatprep.subr.mxu1 %v1497_v20  ;;  %v4213_v39 = vadd.f32 %v1899_v53, %v4093_v62  ;;  %v1478_v62 = vld [vmem:[%s3044_s10 + $0x4f0] sm:$0xff]  ;;  %v1335_v40 = vld [vmem:[%s3044_s10 + $0x78] sm:$0xff]  ;;  %v489_v22 = vld [vmem:[%s4680_s0 + $0x7f8] sm:$0xff] }
 0x216   : > { %2202 = vmatprep.mubr.f32.mxu1 %v1313_v27  ;;  %v1901_v43 = vpop.f32.mrf.mxu0  ;;  %v473_v20 = vld [vmem:[%s4680_s0 + $0x778] sm:$0xff]  ;;  %v4309_v42 = vld [vmem:[%s3044_s10 + $0x8f0] sm:$0xff] }
 0x217   : > { %1008 = vxpose.xlu0.b32.cont [7/16] (narrow) %v480_v30, 56  ;;  %2203 = vmatmul.mubr.f32.gmra.mxu1 %v1312_v29  ;;  %v506_v29 = vld [vmem:[%s4680_s0 + $0x880] sm:$0xff]  ;;  %v507_v43 = vld [vmem:[%s4680_s0 + $0x888] sm:$0xff] }
 0x218   : > { %976 = vxpose.xlu1.b32.cont [7/16] (narrow) %v464_v32, 56  ;;  %2321 = vmatpush1.xpose.msra.mxu1 %v1496_v38  ;;  %v1904_v11 = vpop.f32.mrf.mxu0  ;;  %v4313_v53 = vld [vmem:[%s3044_s10 + $0x868] sm:$0xff] }
 0x219   : > { %2322 = vmatprep.subr.mxu1 %v1479_v7  ;;  %v4224_v48 = vadd.f32 %v1904_v11, %v4104_v3  ;;  %v1443_v3 = vld [vmem:[%s3044_s10 + $0x3d8] sm:$0xff] }
 0x21a   : > { %v1906_v45 = vpop.f32.mrf.mxu0  ;;  %v491_v11 = vld [vmem:[%s4680_s0 + $0x808] sm:$0xff] }
 0x21b   : > { %1009 = vxpose.xlu0.b32.cont [8/16] (narrow) %v481_v41, 56  ;;  %v4332_v45 = vld [vmem:[%s3044_s10 + $0x7d8] sm:$0xff] }
 0x21c   : > { %977 = vxpose.xlu1.b32.cont [8/16] (narrow) %v465_v44, 56  ;;  %2323 = vmatpush1.xpose.msra.mxu1 %v1478_v62  ;;  %v4329_v62 = vld [vmem:[%s3044_s10 + $0x860] sm:$0xff] }
 0x21d   : > { %2324 = vmatprep.subr.mxu1 %v1461_v49 }
 0x21f   : > { %1010 = vxpose.xlu0.b32.cont [9/16] (narrow) %v482_v52, 56 }
 0x220   : > { %978 = vxpose.xlu1.b32.cont [9/16] (narrow) %v466_v54, 56  ;;  %2325 = vmatpush1.xpose.msra.mxu1 %v1460_v55 }
 0x221   : > { %2326 = vmatprep.subr.mxu1 %v1443_v3 }
 0x223   : > { %1011 = vxpose.xlu0.b32.cont [10/16] (narrow) %v483_v56, 56 }
 0x224   : > { %979 = vxpose.xlu1.b32.cont [10/16] (narrow) %v467_v57, 56  ;;  %2327 = vmatpush1.xpose.msra.mxu1 %v1442_v58  ;;  %v492_v57 = vld [vmem:[%s4680_s0 + $0x810] sm:$0xff] }
 0x225   : > { %2328 = vmatprep.subr.mxu1 %v1425_v24  ;;  %v4348_v24 = vld [vmem:[%s3044_s10 + $0x7d0] sm:$0xff] }
 0x227   : > { %1012 = vxpose.xlu0.b32.cont [11/16] (narrow) %v484_v61, 56 }
 0x228   : > { %980 = vxpose.xlu1.b32.cont [11/16] (narrow) %v468_v63, 56  ;;  %2329 = vmatpush1.xpose.msra.mxu1 %v1424_v1  ;;  %v4351_v63 = vld [vmem:[%s3044_s10 + $0x748] sm:$0xff] }
 0x229   : > { %2330 = vmatprep.subr.mxu1 %v1407_v46 }
 0x22b   : > { %1013 = vxpose.xlu0.b32.cont [12/16] (narrow) %v485_v50, 56 }
 0x22c   : > { %981 = vxpose.xlu1.b32.cont [12/16] (narrow) %v469_v47, 56  ;;  %2331 = vmatpush1.xpose.msra.mxu1 %v1406_v4 }
 0x22d   : > { %2332 = vmatprep.subr.mxu1 %v1389_v5  ;;  %v493_v5 = vld [vmem:[%s4680_s0 + $0x818] sm:$0xff] }
 0x22f   : > { %1014 = vxpose.xlu0.b32.cont [13/16] (narrow) %v486_v6, 56 }
 0x230   : > { %982 = vxpose.xlu1.b32.cont [13/16] (narrow) %v470_v25, 56  ;;  %2333 = vmatpush1.xpose.msra.mxu1 %v1388_v2  ;;  %v4367_v25 = vld [vmem:[%s3044_s10 + $0x740] sm:$0xff] }
 0x231   : > { %2334 = vmatprep.subr.mxu1 %v1371_v8  ;;  %v4370_v8 = vld [vmem:[%s3044_s10 + $0x6b8] sm:$0xff] }
 0x233   : > { %1015 = vxpose.xlu0.b32.cont [14/16] (narrow) %v487_v10, 56 }
 0x234   : > { %983 = vxpose.xlu1.b32.cont [14/16] (narrow) %v471_v34, 56  ;;  %2335 = vmatpush1.xpose.msra.mxu1 %v1370_v12 }
 0x235   : > { %2336 = vmatprep.subr.mxu1 %v1353_v33 }
 0x237   : > { %1016 = vxpose.xlu0.b32.cont [15/16] (narrow) %v488_v16, 56 }
 0x238   : > { %984 = vxpose.xlu1.b32.cont [15/16] (narrow) %v472_v17, 56  ;;  %2337 = vmatpush1.xpose.msra.mxu1 %v1352_v18  ;;  %v494_v17 = vld [vmem:[%s4680_s0 + $0x820] sm:$0xff] }
 0x239   : > { %2338 = vmatprep.subr.mxu1 %v1335_v40  ;;  %v4386_v40 = vld [vmem:[%s3044_s10 + $0x6b0] sm:$0xff] }
 0x23b   : > { %1017 = vxpose.xlu0.b32.end [16/16] (narrow) %v489_v22, 56  ;;  %v954_v36 = vpop.trf.xlu0 }
 0x23c   : > { %v1207_v27 = vmul.f32 %v4289_v15, %v954_v36  ;;  %985 = vxpose.xlu1.b32.end [16/16] (narrow) %v473_v20, 56  ;;  %v922_v13 = vpop.trf.xlu1  ;;  %2339 = vmatpush1.xpose.msra.mxu1 %v1334_v26  ;;  %v4389_v20 = vld [vmem:[%s3044_s10 + $0x628] sm:$0xff] }
 0x23d   : > { %v1206_v30 = vmul.f32 %v4297_v19, %v922_v13  ;;  %2696 = vmatprep.subr.mxu1 %v4135_v21 }
 0x23e   : > { %2272 = vmatprep.mubr.f32.mxu0 %v1207_v27 }
 0x23f   : > { %1066 = vxpose.xlu0.b32.start [1/16] (narrow) %v506_v29, 56  ;;  %2273 = vmatmul.mubr.f32.vlgmr.msra.gmra.mxu0 %v1206_v30  ;;  %v955_v32 = vpop.trf.xlu0  ;;  %v1974_v41 = vpop.f32.mrf.mxu1  ;;  %v495_v30 = vld [vmem:[%s4680_s0 + $0x828] sm:$0xff] }
 0x240   : > { %v1225_v38 = vmul.f32 %v4289_v15, %v955_v32  ;;  %1034 = vxpose.xlu1.b32.start [1/16] (narrow) %v490_v14, 56  ;;  %v923_v7 = vpop.trf.xlu1  ;;  %2409 = vmatpush1.xpose.msra.mxu0 %v4309_v42  ;;  %v4325_v44 = vadd.f32 %v1974_v41, %v4147_v28  ;;  %v508_v28 = vld [vmem:[%s4680_s0 + $0x890] sm:$0xff] }
 0x241   : > { %v1224_v21 = vmul.f32 %v4297_v19, %v923_v7  ;;  %2410 = vmatprep.subr.mxu0 %v4313_v53  ;;  %v1976_v49 = vpop.f32.mrf.mxu1  ;;  %v4405_v32 = vld [vmem:[%s3044_s10 + $0x620] sm:$0xff]  ;;  %v4408_v7 = vld [vmem:[%s3044_s10 + $0x598] sm:$0xff] }
 0x242   : > { %2277 = vmatprep.mubr.f32.mxu0 %v1225_v38 }
 0x243   : > { %1067 = vxpose.xlu0.b32.cont [2/16] (narrow) %v507_v43, 56  ;;  %2278 = vmatmul.mubr.f32.gmra.mxu0 %v1224_v21  ;;  %v956_v52 = vpop.trf.xlu0  ;;  %v1979_v3 = vpop.f32.mrf.mxu1 }
 0x244   : > { %v1243_v54 = vmul.f32 %v4289_v15, %v956_v52  ;;  %1035 = vxpose.xlu1.b32.cont [2/16] (narrow) %v491_v11, 56  ;;  %v924_v55 = vpop.trf.xlu1  ;;  %2411 = vmatpush1.xpose.msra.mxu0 %v4329_v62  ;;  %v4344_v58 = vadd.f32 %v1979_v3, %v4161_v51  ;;  %v509_v51 = vld [vmem:[%s4680_s0 + $0x898] sm:$0xff]  ;;  %v496_v52 = vld [vmem:[%s4680_s0 + $0x830] sm:$0xff] }
 0x245   : > { %v1242_v56 = vmul.f32 %v4297_v19, %v924_v55  ;;  %2412 = vmatprep.subr.mxu0 %v4332_v45  ;;  %v1981_v61 = vpop.f32.mrf.mxu1  ;;  %v497_v3 = vld [vmem:[%s4680_s0 + $0x838] sm:$0xff] }
 0x246   : > { %2282 = vmatprep.mubr.f32.mxu0 %v1243_v54  ;;  %v4444_v61 = vld [vmem:[%s3044_s10 + $0x478] sm:$0xff] }
 0x247   : > { %1068 = vxpose.xlu0.b32.cont [3/16] (narrow) %v508_v28, 56  ;;  %2283 = vmatmul.mubr.f32.gmra.mxu0 %v1242_v56  ;;  %v957_v1 = vpop.trf.xlu0  ;;  %v1984_v47 = vpop.f32.mrf.mxu1  ;;  %v4427_v28 = vld [vmem:[%s3044_s10 + $0x508] sm:$0xff] }
 0x248   : > { %v1261_v46 = vmul.f32 %v4289_v15, %v957_v1  ;;  %1036 = vxpose.xlu1.b32.cont [3/16] (narrow) %v492_v57, 56  ;;  %v925_v50 = vpop.trf.xlu1  ;;  %2413 = vmatpush1.xpose.msra.mxu0 %v4348_v24  ;;  %v4363_v6 = vadd.f32 %v1984_v47, %v4174_v0  ;;  %v510_v0 = vld [vmem:[%s4680_s0 + $0x8a0] sm:$0xff]  ;;  %v4441_v57 = vld [vmem:[%s3044_s10 + $0x500] sm:$0xff]  ;;  %v515_v47 = vld [vmem:[%s4680_s0 + $0x8c8] sm:$0xff] }
 0x249   : > { %v1260_v4 = vmul.f32 %v4297_v19, %v925_v50  ;;  %2414 = vmatprep.subr.mxu0 %v4351_v63  ;;  %v1986_v2 = vpop.f32.mrf.mxu1  ;;  %v4455_v50 = vld [vmem:[%s3044_s10 + $0x470] sm:$0xff] }
 0x24a   : > { %2287 = vmatprep.mubr.f32.mxu0 %v1261_v46  ;;  %v514_v46 = vld [vmem:[%s4680_s0 + $0x8c0] sm:$0xff]  ;;  %v4472_v2 = vld [vmem:[%s3044_s10 + $0x358] sm:$0xff] }
 0x24b   : > { %1069 = vxpose.xlu0.b32.cont [4/16] (narrow) %v509_v51, 56  ;;  %2288 = vmatmul.mubr.f32.gmra.mxu0 %v1260_v4  ;;  %v958_v10 = vpop.trf.xlu0  ;;  %v1989_v33 = vpop.f32.mrf.mxu1  ;;  %v4458_v51 = vld [vmem:[%s3044_s10 + $0x3e8] sm:$0xff]  ;;  %v499_v4 = vld [vmem:[%s4680_s0 + $0x848] sm:$0xff] }
 0x24c   : > { %v1279_v34 = vmul.f32 %v4289_v15, %v958_v10  ;;  %1037 = vxpose.xlu1.b32.cont [4/16] (narrow) %v493_v5, 56  ;;  %v926_v12 = vpop.trf.xlu1  ;;  %2415 = vmatpush1.xpose.msra.mxu0 %v4367_v25  ;;  %v4382_v18 = vadd.f32 %v1989_v33, %v4187_v9  ;;  %v511_v9 = vld [vmem:[%s4680_s0 + $0x8a8] sm:$0xff]  ;;  %v4469_v5 = vld [vmem:[%s3044_s10 + $0x3e0] sm:$0xff] }
 0x24d   : > { %v1278_v16 = vmul.f32 %v4297_v19, %v926_v12  ;;  %2416 = vmatprep.subr.mxu0 %v4370_v8  ;;  %v1991_v22 = vpop.f32.mrf.mxu1  ;;  %v516_v10 = vld [vmem:[%s4680_s0 + $0x8d0] sm:$0xff]  ;;  %v4483_v12 = vld [vmem:[%s3044_s10 + $0x350] sm:$0xff]  ;;  %v517_v33 = vld [vmem:[%s4680_s0 + $0x8d8] sm:$0xff] }
 0x24e   : > { %2292 = vmatprep.mubr.f32.mxu0 %v1279_v34  ;;  %v500_v34 = vld [vmem:[%s4680_s0 + $0x850] sm:$0xff] }
 0x24f   : > { %1070 = vxpose.xlu0.b32.cont [5/16] (narrow) %v510_v0, 56  ;;  %2293 = vmatmul.mubr.f32.gmra.mxu0 %v1278_v16  ;;  %v959_v26 = vpop.trf.xlu0  ;;  %v1994_v13 = vpop.f32.mrf.mxu1  ;;  %v4486_v0 = vld [vmem:[%s3044_s10 + $0x2c8] sm:$0xff]  ;;  %v4500_v22 = vld [vmem:[%s3044_s10 + $0x238] sm:$0xff] }
 0x250   : > { %v1297_v36 = vmul.f32 %v4289_v15, %v959_v26  ;;  %1038 = vxpose.xlu1.b32.cont [5/16] (narrow) %v494_v17, 56  ;;  %v927_v27 = vpop.trf.xlu1  ;;  %2417 = vmatpush1.xpose.msra.mxu0 %v4386_v40  ;;  %v4401_v14 = vadd.f32 %v1994_v13, %v4200_v23  ;;  %v512_v23 = vld [vmem:[%s4680_s0 + $0x8b0] sm:$0xff]  ;;  %v501_v16 = vld [vmem:[%s4680_s0 + $0x858] sm:$0xff]  ;;  %v518_v26 = vld [vmem:[%s4680_s0 + $0x8e0] sm:$0xff] }
 0x251   : > { %v1296_v29 = vmul.f32 %v4297_v19, %v927_v27  ;;  %2418 = vmatprep.subr.mxu0 %v4389_v20  ;;  %v1996_v38 = vpop.f32.mrf.mxu1  ;;  %v4497_v17 = vld [vmem:[%s3044_s10 + $0x2c0] sm:$0xff]  ;;  %v4511_v27 = vld [vmem:[%s3044_s10 + $0x230] sm:$0xff] }
 0x252   : > { %2297 = vmatprep.mubr.f32.mxu0 %v1297_v36  ;;  %v502_v36 = vld [vmem:[%s4680_s0 + $0x860] sm:$0xff]  ;;  %v519_v13 = vld [vmem:[%s4680_s0 + $0x8e8] sm:$0xff] }
 0x253   : > { %1071 = vxpose.xlu0.b32.cont [6/16] (narrow) %v511_v9, 56  ;;  %2298 = vmatmul.mubr.f32.gmra.mxu0 %v1296_v29  ;;  %v960_v43 = vpop.trf.xlu0  ;;  %v1999_v11 = vpop.f32.mrf.mxu1  ;;  %v4514_v9 = vld [vmem:[%s3044_s10 + $0x1a8] sm:$0xff]  ;;  %v503_v29 = vld [vmem:[%s4680_s0 + $0x868] sm:$0xff] }
 0x254   : > { %v1315_v41 = vmul.f32 %v4289_v15, %v960_v43  ;;  %1039 = vxpose.xlu1.b32.cont [6/16] (narrow) %v495_v30, 56  ;;  %v928_v21 = vpop.trf.xlu1  ;;  %2419 = vmatpush1.xpose.msra.mxu0 %v4405_v32  ;;  %v4420_v54 = vadd.f32 %v1999_v11, %v4213_v39  ;;  %v4424_v15 = vld [vmem:[%s3044_s10 + $0x590] sm:$0xff]  ;;  %v4525_v30 = vld [vmem:[%s3044_s10 + $0x1a0] sm:$0xff]  ;;  %v4528_v38 = vld [vmem:[%s3044_s10 + $0x118] sm:$0xff] }
 0x255   : > { %v1314_v49 = vmul.f32 %v4297_v19, %v928_v21  ;;  %2420 = vmatprep.subr.mxu0 %v4408_v7  ;;  %v2001_v55 = vpop.f32.mrf.mxu1  ;;  %v513_v19 = vld [vmem:[%s4680_s0 + $0x8b8] sm:$0xff]  ;;  %v520_v43 = vld [vmem:[%s4680_s0 + $0x8f0] sm:$0xff]  ;;  %v4539_v21 = vld [vmem:[%s3044_s10 + $0x110] sm:$0xff] }
 0x256   : > { %2302 = vmatprep.mubr.f32.mxu0 %v1315_v41  ;;  %v504_v41 = vld [vmem:[%s4680_s0 + $0x870] sm:$0xff]  ;;  %v521_v11 = vld [vmem:[%s4680_s0 + $0x8f8] sm:$0xff] }
 0x257   : > { %1072 = vxpose.xlu0.b32.cont [7/16] (narrow) %v512_v23, 56  ;;  %2303 = vmatmul.mubr.f32.gmra.mxu0 %v1314_v49  ;;  %v2004_v39 = vpop.f32.mrf.mxu1  ;;  %v4542_v23 = vld [vmem:[%s3044_s10 + $0x88] sm:$0xff]  ;;  %v2801_v49 = vld [vmem:[#allocation2 + $0x8] sm:$0xff] }
 0x258   : > { %1040 = vxpose.xlu1.b32.cont [7/16] (narrow) %v496_v52, 56  ;;  %2421 = vmatpush1.xpose.msra.mxu0 %v4424_v15  ;;  %v4437_v56 = vadd.f32 %v2004_v39, %v4224_v48  ;;  %v498_v48 = vld [vmem:[%s4680_s0 + $0x840] sm:$0xff]  ;;  %v4549_v52 = vrot.slane %v2801_v49, %v1134_v59  ;;  %v505_v55 = vld [vmem:[%s4680_s0 + $0x878] sm:$0xff] }
 0x259   : > { %2422 = vmatprep.subr.mxu0 %v4427_v28  ;;  %v2006_v1 = vpop.f32.mrf.mxu1  ;;  %v4561_v39 = vld [vmem:[%s3044_s10 + $0x80] sm:$0xff]  ;;  %s2731_s10 = smul.u32 56, %s3040_s8  ;;  %s2693_s8 = sshll.u32 (%p4695_p3), %s2902_s15, 3 }
 0x25a   : > { %s2525_s24 = scalar_lea.vmem (%p4695_p3), %s4683_s3, %s2693_s8 }
 0x25b   : > { %1073 = vxpose.xlu0.b32.cont [8/16] (narrow) %v513_v19, 56  ;;  %v4557_v19 = vrot.slane %v2801_v49, %v1130_v60  ;;  %s4640_s28 = scalar_lea.vmem [#allocation6], %s2731_s10 }
 0x25c   : > { %1041 = vxpose.xlu1.b32.cont [8/16] (narrow) %v497_v3, 56  ;;  %2423 = vmatpush1.xpose.msra.mxu0 %v4441_v57 }
 0x25d   : > { %2424 = vmatprep.subr.mxu0 %v4444_v61 }
 0x25f   : > { %1074 = vxpose.xlu0.b32.cont [9/16] (narrow) %v514_v46, 56 }
 0x260   : > { %1042 = vxpose.xlu1.b32.cont [9/16] (narrow) %v498_v48, 56  ;;  %2425 = vmatpush1.xpose.msra.mxu0 %v4455_v50 }
 0x261   : > { %2426 = vmatprep.subr.mxu0 %v4458_v51 }
 0x263   : > { %1075 = vxpose.xlu0.b32.cont [10/16] (narrow) %v515_v47, 56 }
 0x264   : > { %1043 = vxpose.xlu1.b32.cont [10/16] (narrow) %v499_v4, 56  ;;  %2427 = vmatpush1.xpose.msra.mxu0 %v4469_v5 }
 0x265   : > { %2428 = vmatprep.subr.mxu0 %v4472_v2 }
 0x267   : > { %1076 = vxpose.xlu0.b32.cont [11/16] (narrow) %v516_v10, 56 }
 0x268   : > { %1044 = vxpose.xlu1.b32.cont [11/16] (narrow) %v500_v34, 56  ;;  %2429 = vmatpush1.xpose.msra.mxu0 %v4483_v12 }
 0x269   : > { %2430 = vmatprep.subr.mxu0 %v4486_v0 }
 0x26b   : > { %1077 = vxpose.xlu0.b32.cont [12/16] (narrow) %v517_v33, 56 }
 0x26c   : > { %1045 = vxpose.xlu1.b32.cont [12/16] (narrow) %v501_v16, 56  ;;  %2431 = vmatpush1.xpose.msra.mxu0 %v4497_v17 }
 0x26d   : > { %2432 = vmatprep.subr.mxu0 %v4500_v22 }
 0x26f   : > { %1078 = vxpose.xlu0.b32.cont [13/16] (narrow) %v518_v26, 56 }
 0x270   : > { %1046 = vxpose.xlu1.b32.cont [13/16] (narrow) %v502_v36, 56  ;;  %2433 = vmatpush1.xpose.msra.mxu0 %v4511_v27 }
 0x271   : > { %2434 = vmatprep.subr.mxu0 %v4514_v9 }
 0x273   : > { %1079 = vxpose.xlu0.b32.cont [14/16] (narrow) %v519_v13, 56 }
 0x274   : > { %1047 = vxpose.xlu1.b32.cont [14/16] (narrow) %v503_v29, 56  ;;  %2435 = vmatpush1.xpose.msra.mxu0 %v4525_v30 }
 0x275   : > { %2436 = vmatprep.subr.mxu0 %v4528_v38 }
 0x277   : > { %1080 = vxpose.xlu0.b32.cont [15/16] (narrow) %v520_v43, 56 }
 0x278   : > { %1048 = vxpose.xlu1.b32.cont [15/16] (narrow) %v504_v41, 56  ;;  %2437 = vmatpush1.xpose.msra.mxu0 %v4539_v21 }
 0x279   : > { %2438 = vmatprep.subr.mxu0 %v4542_v23 }
 0x27b   : > { %1081 = vxpose.xlu0.b32.end [16/16] (narrow) %v521_v11, 56  ;;  %v1018_v3 = vpop.trf.xlu0 }
 0x27c   : > { %v1209_v1 = vmul.f32 %v4549_v52, %v1018_v3  ;;  %1049 = vxpose.xlu1.b32.end [16/16] (narrow) %v505_v55, 56  ;;  %v986_v59 = vpop.trf.xlu1  ;;  %2439 = vmatpush1.xpose.msra.mxu0 %v4561_v39 }
 0x27d   : > { %v1208_v46 = vmul.f32 %v4557_v19, %v986_v59 }
 0x27e   : > { %2372 = vmatprep.mubr.f32.mxu1 %v1209_v1 }
 0x27f   : > { %v2074_v48 = vpop.f32.mrf.mxu0  ;;  %2373 = vmatmul.mubr.f32.vlgmr.msra.gmra.mxu1 %v1208_v46  ;;  %v1019_v31 = vpop.trf.xlu0 }
 0x280   : > { %v4567_v60 = vadd.f32 %v2074_v48, %v4325_v44  ;;  %v1227_v47 = vmul.f32 %v4549_v52, %v1019_v31  ;;  %v987_v4 = vpop.trf.xlu1  ;;  %2712 = vmatpush1.xpose.msra.mxu1 %v4309_v42 }
 0x281   : > { %v1226_v10 = vmul.f32 %v4557_v19, %v987_v4  ;;  %v2076_v34 = vpop.f32.mrf.mxu0  ;;  %2697 = vmatprep.subr.mxu1 %v4313_v53 }
 0x282   : > { %2377 = vmatprep.mubr.f32.mxu1 %v1227_v47 }
 0x283   : > { %v2079_v33 = vpop.f32.mrf.mxu0  ;;  %2378 = vmatmul.mubr.f32.gmra.mxu1 %v1226_v10  ;;  %v1020_v16 = vpop.trf.xlu0 }
 0x284   : > { %v4574_v26 = vadd.f32 %v2079_v33, %v4344_v58  ;;  %v1245_v44 = vmul.f32 %v4549_v52, %v1020_v16  ;;  %v988_v36 = vpop.trf.xlu1  ;;  %2713 = vmatpush1.xpose.msra.mxu1 %v4329_v62 }
 0x285   : > { %v1244_v13 = vmul.f32 %v4557_v19, %v988_v36  ;;  %v2081_v42 = vpop.f32.mrf.mxu0  ;;  %2698 = vmatprep.subr.mxu1 %v4332_v45 }
 0x286   : > { %2382 = vmatprep.mubr.f32.mxu1 %v1245_v44 }
 0x287   : > { %v2084_v29 = vpop.f32.mrf.mxu0  ;;  %2383 = vmatmul.mubr.f32.gmra.mxu1 %v1244_v13  ;;  %v1021_v53 = vpop.trf.xlu0 }
 0x288   : > { %v4581_v43 = vadd.f32 %v2084_v29, %v4363_v6  ;;  %v1263_v58 = vmul.f32 %v4549_v52, %v1021_v53  ;;  %v989_v41 = vpop.trf.xlu1  ;;  %2714 = vmatpush1.xpose.msra.mxu1 %v4348_v24 }
 0x289   : > { %v1262_v11 = vmul.f32 %v4557_v19, %v989_v41  ;;  %v2086_v62 = vpop.f32.mrf.mxu0  ;;  %2699 = vmatprep.subr.mxu1 %v4351_v63 }
 0x28a   : > { %2387 = vmatprep.mubr.f32.mxu1 %v1263_v58 }
 0x28b   : > { %v2089_v49 = vpop.f32.mrf.mxu0  ;;  %2388 = vmatmul.mubr.f32.gmra.mxu1 %v1262_v11  ;;  %v1022_v45 = vpop.trf.xlu0 }
 0x28c   : > { %v4588_v55 = vadd.f32 %v2089_v49, %v4382_v18  ;;  %v1281_v6 = vmul.f32 %v4549_v52, %v1022_v45  ;;  %v990_v3 = vpop.trf.xlu1  ;;  %2715 = vmatpush1.xpose.msra.mxu1 %v4367_v25 }
 0x28d   : > { %v1280_v1 = vmul.f32 %v4557_v19, %v990_v3  ;;  %v2091_v24 = vpop.f32.mrf.mxu0  ;;  %2700 = vmatprep.subr.mxu1 %v4370_v8 }
 0x28e   : > { %2392 = vmatprep.mubr.f32.mxu1 %v1281_v6 }
 0x28f   : > { %v2094_v59 = vpop.f32.mrf.mxu0  ;;  %2393 = vmatmul.mubr.f32.gmra.mxu1 %v1280_v1  ;;  %v1023_v63 = vpop.trf.xlu0 }
 0x290   : > { %v4595_v46 = vadd.f32 %v2094_v59, %v4401_v14  ;;  %v1299_v18 = vmul.f32 %v4549_v52, %v1023_v63  ;;  %v991_v48 = vpop.trf.xlu1  ;;  %2716 = vmatpush1.xpose.msra.mxu1 %v4386_v40 }
 0x291   : > { %v1298_v31 = vmul.f32 %v4557_v19, %v991_v48  ;;  %v2096_v25 = vpop.f32.mrf.mxu0  ;;  %2701 = vmatprep.subr.mxu1 %v4389_v20 }
 0x292   : > { %2397 = vmatprep.mubr.f32.mxu1 %v1299_v18 }
 0x293   : > { %v2099_v47 = vpop.f32.mrf.mxu0  ;;  %2398 = vmatmul.mubr.f32.gmra.mxu1 %v1298_v31  ;;  %v1024_v8 = vpop.trf.xlu0 }
 0x294   : > { %v4602_v4 = vadd.f32 %v2099_v47, %v4420_v54  ;;  %v1317_v14 = vmul.f32 %v4549_v52, %v1024_v8  ;;  %v992_v10 = vpop.trf.xlu1  ;;  %2717 = vmatpush1.xpose.msra.mxu1 %v4405_v32  ;;  %v1100_v32 = vld [vmem:[#allocation2 + $0x10] sm:$0x3] }
 0x295   : > { %v1316_v34 = vmul.f32 %v4557_v19, %v992_v10  ;;  %v2101_v40 = vpop.f32.mrf.mxu0  ;;  %2702 = vmatprep.subr.mxu1 %v4408_v7  ;;  %v1175_v7 = vrot.slane %v1100_v32, %v3278_v35 }
 0x296   : > { %2402 = vmatprep.mubr.f32.mxu1 %v1317_v14 }
 0x297   : > { %v2104_v33 = vpop.f32.mrf.mxu0  ;;  %2403 = vmatmul.mubr.f32.gmra.mxu1 %v1316_v34 }
 0x298   : > { %v4609_v20 = vadd.f32 %v2104_v33, %v4437_v56  ;;  %2718 = vmatpush1.xpose.msra.mxu1 %v4424_v15  ;;  %v1171_v15 = vrot.slane %v1100_v32, %v3283_v37 }
 0x299   : > { %2703 = vmatprep.subr.mxu1 %v4427_v28  ;;  %v2106_v54 = vpop.f32.mrf.mxu0 }
 0x29c   : > { %2719 = vmatpush1.xpose.msra.mxu1 %v4441_v57 }
 0x29d   : > { %2704 = vmatprep.subr.mxu1 %v4444_v61 }
 0x2a0   : > { %2720 = vmatpush1.xpose.msra.mxu1 %v4455_v50 }
 0x2a1   : > { %2705 = vmatprep.subr.mxu1 %v4458_v51 }
 0x2a4   : > { %2721 = vmatpush1.xpose.msra.mxu1 %v4469_v5 }
 0x2a5   : > { %2706 = vmatprep.subr.mxu1 %v4472_v2 }
 0x2a8   : > { %2722 = vmatpush1.xpose.msra.mxu1 %v4483_v12 }
 0x2a9   : > { %2707 = vmatprep.subr.mxu1 %v4486_v0 }
 0x2ac   : > { %2723 = vmatpush1.xpose.msra.mxu1 %v4497_v17 }
 0x2ad   : > { %2708 = vmatprep.subr.mxu1 %v4500_v22 }
 0x2b0   : > { %2724 = vmatpush1.xpose.msra.mxu1 %v4511_v27 }
 0x2b1   : > { %2709 = vmatprep.subr.mxu1 %v4514_v9 }
 0x2b4   : > { %2725 = vmatpush1.xpose.msra.mxu1 %v4525_v30 }
 0x2b5   : > { %2710 = vmatprep.subr.mxu1 %v4528_v38 }
 0x2b8   : > { %2726 = vmatpush1.xpose.msra.mxu1 %v4539_v21 }
 0x2b9   : > { %2711 = vmatprep.subr.mxu1 %v4542_v23 }
 0x2bb   : > { %v1082_v28 = vpop.trf.xlu0 }
 0x2bc   : > { %v1211_v56 = vmul.f32 %v1175_v7, %v1082_v28  ;;  %v1050_v57 = vpop.trf.xlu1  ;;  %2727 = vmatpush1.xpose.msra.mxu1 %v4561_v39 }
 0x2bd   : > { %v1210_v61 = vmul.f32 %v1171_v15, %v1050_v57 }
 0x2be   : > { %2472 = vmatprep.mubr.f32.mxu0 %v1211_v56 }
 0x2bf   : > { %v2174_v50 = vpop.f32.mrf.mxu1  ;;  %2473 = vmatmul.mubr.f32.vlgmr.msra.gmra.mxu0 %v1210_v61  ;;  %v1083_v51 = vpop.trf.xlu0 }
 0x2c0   : > { %v2175_v5 = vadd.f32 %v2174_v50, %v4567_v60  ;;  %v1229_v2 = vmul.f32 %v1175_v7, %v1083_v51  ;;  %v1051_v35 = vpop.trf.xlu1 }
 0x2c1   : > { %v1228_v12 = vmul.f32 %v1171_v15, %v1051_v35  ;;  %v2176_v0 = vpop.f32.mrf.mxu1 }
 0x2c2   : > { %2477 = vmatprep.mubr.f32.mxu0 %v1229_v2 }
 0x2c3   : > { %v2179_v37 = vpop.f32.mrf.mxu1  ;;  %2478 = vmatmul.mubr.f32.gmra.mxu0 %v1228_v12  ;;  %v1084_v17 = vpop.trf.xlu0 }
 0x2c4   : > { %v2180_v22 = vadd.f32 %v2179_v37, %v4574_v26  ;;  %v1247_v27 = vmul.f32 %v1175_v7, %v1084_v17  ;;  %v1052_v9 = vpop.trf.xlu1 }
 0x2c5   : > { %v1246_v30 = vmul.f32 %v1171_v15, %v1052_v9  ;;  %v2181_v38 = vpop.f32.mrf.mxu1 }
 0x2c6   : > { %2482 = vmatprep.mubr.f32.mxu0 %v1247_v27 }
 0x2c7   : > { %v2184_v21 = vpop.f32.mrf.mxu1  ;;  %2483 = vmatmul.mubr.f32.gmra.mxu0 %v1246_v30  ;;  %v1085_v23 = vpop.trf.xlu0 }
 0x2c8   : > { %v2185_v52 = vadd.f32 %v2184_v21, %v4581_v43  ;;  %v1265_v19 = vmul.f32 %v1175_v7, %v1085_v23  ;;  %v1053_v39 = vpop.trf.xlu1 }
 0x2c9   : > { %v1264_v60 = vmul.f32 %v1171_v15, %v1053_v39  ;;  %v2186_v16 = vpop.f32.mrf.mxu1 }
 0x2ca   : > { %2487 = vmatprep.mubr.f32.mxu0 %v1265_v19 }
 0x2cb   : > { %v2189_v44 = vpop.f32.mrf.mxu1  ;;  %2488 = vmatmul.mubr.f32.gmra.mxu0 %v1264_v60  ;;  %v1086_v36 = vpop.trf.xlu0 }
 0x2cc   : > { %v2190_v26 = vadd.f32 %v2189_v44, %v4588_v55  ;;  %v1283_v13 = vmul.f32 %v1175_v7, %v1086_v36  ;;  %v1054_v42 = vpop.trf.xlu1 }
 0x2cd   : > { %v1282_v29 = vmul.f32 %v1171_v15, %v1054_v42  ;;  %v2191_v53 = vpop.f32.mrf.mxu1 }
 0x2ce   : > { %2492 = vmatprep.mubr.f32.mxu1 %v1283_v13 }
 0x2cf   : > { %v2194_v58 = vpop.f32.mrf.mxu1  ;;  %2493 = vmatmul.mubr.f32.vlgmr.msra.gmra.mxu1 %v1282_v29  ;;  %v1087_v41 = vpop.trf.xlu0 }
 0x2d0   : > { %v2195_v43 = vadd.f32 %v2194_v58, %v4595_v46  ;;  %v1301_v11 = vmul.f32 %v1175_v7, %v1087_v41  ;;  %v1055_v62 = vpop.trf.xlu1 }
 0x2d1   : > { %v1300_v49 = vmul.f32 %v1171_v15, %v1055_v62  ;;  %v2196_v45 = vpop.f32.mrf.mxu1 }
 0x2d2   : > { %2497 = vmatprep.mubr.f32.mxu1 %v1301_v11 }
 0x2d3   : > { %v2199_v6 = vpop.f32.mrf.mxu1  ;;  %2498 = vmatmul.mubr.f32.gmra.mxu1 %v1300_v49  ;;  %v1088_v3 = vpop.trf.xlu0 }
 0x2d4   : > { %v2200_v55 = vadd.f32 %v2199_v6, %v4602_v4  ;;  %v1319_v1 = vmul.f32 %v1175_v7, %v1088_v3  ;;  %v1056_v24 = vpop.trf.xlu1 }
 0x2d5   : > { %v1318_v59 = vmul.f32 %v1171_v15, %v1056_v24  ;;  %v2201_v63 = vpop.f32.mrf.mxu1 }
 0x2d6   : > { %2502 = vmatprep.mubr.f32.mxu1 %v1319_v1 }
 0x2d7   : > { %v2204_v18 = vpop.f32.mrf.mxu1  ;;  %2503 = vmatmul.mubr.f32.gmra.mxu1 %v1318_v59 }
 0x2d8   : > { %v2205_v48 = vadd.f32 %v2204_v18, %v4609_v20 }
 0x2d9   : > { %v2206_v46 = vpop.f32.mrf.mxu1 }
 0x2ff   : > { %v2274_v31 = vpop.f32.mrf.mxu0 }
 0x300   : > { %v2275_v25 = vadd.f32 %v2274_v31, %v2175_v5 }
 0x301   : > { %v2276_v47 = vpop.f32.mrf.mxu0 }
 0x303   : > { %v2279_v8 = vpop.f32.mrf.mxu0 }
 0x304   : > { %v2280_v14 = vadd.f32 %v2279_v8, %v2180_v22 }
 0x305   : > { %v2281_v10 = vpop.f32.mrf.mxu0 }
 0x307   : > { %v2284_v34 = vpop.f32.mrf.mxu0 }
 0x308   : > { %v2285_v40 = vadd.f32 %v2284_v34, %v2185_v52 }
 0x309   : > { %v2286_v33 = vpop.f32.mrf.mxu0 }
 0x30b   : > { %v2289_v4 = vpop.f32.mrf.mxu0 }
 0x30c   : > { %v2290_v54 = vadd.f32 %v2289_v4, %v2190_v26 }
 0x30d   : > { %v2291_v32 = vpop.f32.mrf.mxu0 }
 0x30f   : > { %v2294_v7 = vpop.f32.mrf.mxu0 }
 0x310   : > { %v2295_v15 = vadd.f32 %v2294_v7, %v2195_v43 }
 0x311   : > { %v2296_v28 = vpop.f32.mrf.mxu0 }
 0x313   : > { %v2299_v56 = vpop.f32.mrf.mxu0 }
 0x314   : > { %v2300_v57 = vadd.f32 %v2299_v56, %v2200_v55 }
 0x315   : > { %v2301_v61 = vpop.f32.mrf.mxu0 }
 0x317   : > { %v2304_v20 = vpop.f32.mrf.mxu0 }
 0x318   : > { %v2305_v50 = vadd.f32 %v2304_v20, %v2205_v48 }
 0x319   : > { %v2306_v51 = vpop.f32.mrf.mxu0 }
 0x33f   : > { %v2374_v5 = vpop.f32.mrf.mxu1 }
 0x340   : > { %v2375_v52 = vadd.f32 %v2374_v5, %v2275_v25 }
 0x341   : > { %v2376_v2 = vpop.f32.mrf.mxu1 }
 0x343   : > { %v2379_v35 = vpop.f32.mrf.mxu1 }
 0x344   : > { %v2380_v16 = vadd.f32 %v2379_v35, %v2280_v14 }
 0x345   : > { %v2381_v12 = vpop.f32.mrf.mxu1 }
 0x347   : > { %v2384_v0 = vpop.f32.mrf.mxu1 }
 0x348   : > { %v2385_v13 = vadd.f32 %v2384_v0, %v2285_v40 }
 0x349   : > { %v2386_v37 = vpop.f32.mrf.mxu1 }
 0x34b   : > { %v2389_v17 = vpop.f32.mrf.mxu1 }
 0x34c   : > { %v2390_v58 = vadd.f32 %v2389_v17, %v2290_v54 }
 0x34d   : > { %v2391_v22 = vpop.f32.mrf.mxu1 }
 0x34f   : > { %v2394_v27 = vpop.f32.mrf.mxu1 }
 0x350   : > { %v2395_v62 = vadd.f32 %v2394_v27, %v2295_v15 }
 0x351   : > { %v2396_v9 = vpop.f32.mrf.mxu1 }
 0x353   : > { %v2399_v30 = vpop.f32.mrf.mxu1 }
 0x354   : > { %v2400_v3 = vadd.f32 %v2399_v30, %v2300_v57 }
 0x355   : > { %v2401_v38 = vpop.f32.mrf.mxu1 }
 0x357   : > { %v2404_v21 = vpop.f32.mrf.mxu1 }
 0x358   : > { %v2405_v59 = vadd.f32 %v2404_v21, %v2305_v50 }
 0x359   : > { %v2406_v23 = vpop.f32.mrf.mxu1 }
 0x37f   : > { %v2474_v19 = vpop.f32.mrf.mxu0 }
 0x380   : > { %v2475_v39 = vadd.f32 %v2474_v19, %v2375_v52 }
 0x381   : > { %v2476_v60 = vpop.f32.mrf.mxu0 }
 0x382   : > { %2508 = vst [vmem:[%s4640_s28] sm:$0xff] %v2475_v39 }
 0x383   : > { %v2479_v44 = vpop.f32.mrf.mxu0 }
 0x384   : > { %v2480_v36 = vadd.f32 %v2479_v44, %v2380_v16 }
 0x385   : > { %v2481_v26 = vpop.f32.mrf.mxu0 }
 0x386   : > { %2509 = vst [vmem:[%s4640_s28 + $0x8] sm:$0xff] %v2480_v36 }
 0x387   : > { %v2484_v42 = vpop.f32.mrf.mxu0 }
 0x388   : > { %v2485_v29 = vadd.f32 %v2484_v42, %v2385_v13 }
 0x389   : > { %v2486_v53 = vpop.f32.mrf.mxu0  ;;  %v2566_v46 = vld [vmem:[%s4640_s28] sm:$0xff] (%p4695_p3) }
 0x38a   : > { %2510 = vst [vmem:[%s4640_s28 + $0x10] sm:$0xff] %v2485_v29  ;;  %2567 = vst [vmem:[%s2525_s24] sm:$0xff] (%p4695_p3), %v2566_v46 }
 0x38b   : > { %v2489_v41 = vpop.f32.mrf.mxu0 }
 0x38c   : > { %v2490_v43 = vadd.f32 %v2489_v41, %v2390_v58 }
 0x38d   : > { %v2491_v11 = vpop.f32.mrf.mxu0  ;;  %v2568_v31 = vld [vmem:[%s4640_s28 + $0x8] sm:$0xff] (%p4695_p3) }
 0x38e   : > { %2511 = vst [vmem:[%s4640_s28 + $0x18] sm:$0xff] %v2490_v43  ;;  %2569 = vst [vmem:[%s2525_s24 + $0x18] sm:$0xff] (%p4695_p3), %v2568_v31 }
 0x38f   : > { %v2494_v49 = vpop.f32.mrf.mxu1 }
 0x390   : > { %v2495_v45 = vadd.f32 %v2494_v49, %v2395_v62 }
 0x391   : > { %v2496_v6 = vpop.f32.mrf.mxu1  ;;  %v2570_v25 = vld [vmem:[%s4640_s28 + $0x10] sm:$0xff] (%p4695_p3) }
 0x392   : > { %2512 = vst [vmem:[%s4640_s28 + $0x20] sm:$0xff] %v2495_v45  ;;  %2571 = vst [vmem:[%s2525_s24 + $0x30] sm:$0xff] (%p4695_p3), %v2570_v25 }
 0x393   : > { %v2499_v55 = vpop.f32.mrf.mxu1 }
 0x394   : > { %v2500_v1 = vadd.f32 %v2499_v55, %v2400_v3 }
 0x395   : > { %v2501_v24 = vpop.f32.mrf.mxu1  ;;  %v2572_v47 = vld [vmem:[%s4640_s28 + $0x18] sm:$0xff] (%p4695_p3) }
 0x396   : > { %2513 = vst [vmem:[%s4640_s28 + $0x28] sm:$0xff] %v2500_v1  ;;  %2521 = sbr.rel (!%p4695_p3) target bundleno = 931 (0x3a3), region = 44  ;;  %2573 = vst [vmem:[%s2525_s24 + $0x48] sm:$0xff] (%p4695_p3), %v2572_v47 }
 0x397   : > { %v2504_v63 = vpop.f32.mrf.mxu1 }
 0x398   : > { %v2505_v18 = vadd.f32 %v2504_v63, %v2405_v59 }
 0x399   : > { %v2506_v48 = vpop.f32.mrf.mxu1  ;;  %v2574_v8 = vld [vmem:[%s4640_s28 + $0x20] sm:$0xff] (%p4695_p3) }
 0x39a   : > { %2514 = vst [vmem:[%s4640_s28 + $0x30] sm:$0x1] %v2505_v18  ;;  %2575 = vst [vmem:[%s2525_s24 + $0x60] sm:$0xff] (%p4695_p3), %v2574_v8 }
 0x39d   : > { %v2576_v14 = vld [vmem:[%s4640_s28 + $0x28] sm:$0xff] }
 0x39e   : > { %2577 = vst [vmem:[%s2525_s24 + $0x78] sm:$0xff] %v2576_v14 }
 0x3a1   : > { %v2578_v10 = vld [vmem:[%s4640_s28 + $0x30] sm:$0xff] }
 0x3a2   : > { %2579 = vst [vmem:[%s2525_s24 + $0x90] sm:$0xff] %v2578_v10 }
 0x3a3 PF: > { %s17_s17 = sadd.s32 1, %s2910_s17   ;;  %s4696_s12 = smov %s2894_s13 }
 0x3a4   : > { %p14_p9 = scmp.ge.s32.totalorder %s17_s17, 5   ;;  %s4697_s13 = smov %s2898_s14 }
 0x3a5   : > { %s4698_s14 = smov %s3031_s7  ;;  %s4699_s15 = smov %s2906_s16 }
 0x3a6   : > { %s4700_s16 = smov %s4702_s5  ;;  %16 = sbr.rel (!%p14_p9) target bundleno = 5 (0x5), region = 118 }
 0x3ab   :  { %2595 = vsyncpa [#allocation3], 1 }
 0x3ac   :  { %2597 = vsyncpa [#allocation3 + $0x1], 1 }
 0x3ad   :  { %2598 = vsyncpa [#allocation5], 1 }
 0x3ae   :  { %2600 = vsyncpa [#allocation5 + $0x1], 1 }

</bundles_post_ra>
